<compile_context>
chip_gen: v7x
topology: tpu7x:2x2x1
jax: 0.10.0
libtpu: 0.0.40
codegen_flags: <defaults>
</compile_context>

<pallas_src>
import functools

import jax
import jax.numpy as jnp
from jax.experimental import pallas as pl
from jax.experimental.pallas import tpu as pltpu


# ------------------------------ Pallas kernel --------------------------------

def _tcn_fused_kernel(*refs, block_cfgs, in_scale, apply_sigmoid):
    """Whole-network kernel for a (Bt, L, C0) slab of the batch.

    refs = (x_ref, *weight_refs, o_ref)
      x_ref   : (Bt, L, C0)        input slab (NLC layout)
      weights : per block [w1, b1, w2, b2, (wd, bd)?], then folded head weight
                conv weights are (K, C_in, C_out) bf16 taps; biases (1, C_out) f32
      o_ref   : (Bt, 1, cls_out)   output slab
    """
    x_ref = refs[0]
    o_ref = refs[-1]
    w_refs = refs[1:-1]

    Bt, L, _ = x_ref.shape
    h = x_ref[...].astype(jnp.float32)                      # (Bt, L, C0)
    if in_scale is not None:                                # only if not folded
        h = h * in_scale

    idx = [0]

    def nxt():
        r = w_refs[idx[0]]
        idx[0] += 1
        return r

    def causal_conv(h, w_ref, b_ref, K, d):
        """Dilated causal conv as K per-tap MXU dots, all in registers.

        Tap k sees h shifted right in time by (K-1-k)*d rows (zero fill); each
        tap is one (Bt*L, C_in) @ (C_in, C_out) dot with bf16 operands and f32
        accumulation.  No VMEM scratch, no im2col.
        """
        _, _, C_in = h.shape
        C_out = w_ref.shape[-1]
        acc = None
        for k in range(K):                                  # static tap unroll
            shift = (K - 1 - k) * d                         # causal left pad
            if shift == 0:
                hk = h
            else:
                zeros = jnp.zeros((Bt, shift, C_in), jnp.float32)
                hk = jnp.concatenate([zeros, h[:, :L - shift, :]], axis=1)
            part = jnp.dot(hk.reshape(Bt * L, C_in).astype(jnp.bfloat16),
                           w_ref[k],                        # (C_in, C_out) bf16
                           preferred_element_type=jnp.float32)
            acc = part if acc is None else acc + part
        out = acc + b_ref[...]                              # (Bt*L,Co)+(1,Co)
        return out.reshape(Bt, L, C_out)

    for (K, d, has_ds) in block_cfgs:
        w1, b1, w2, b2 = nxt(), nxt(), nxt(), nxt()
        out1 = jnp.maximum(causal_conv(h, w1, b1, K, d), 0.0)
        out2 = jnp.maximum(causal_conv(out1, w2, b2, K, d), 0.0)
        if has_ds:
            wd, bd = nxt(), nxt()
            res = causal_conv(h, wd, bd, 1, 1)              # 1x1 downsample
        else:
            res = h
        h = jnp.maximum(out2 + res, 0.0)

    # Head: global max pool over L, then folded (lin1 @ lin2 @ cls) matmul.
    fold_w = nxt()
    pooled = jnp.max(h, axis=1)                             # (Bt, C_last)
    y = jnp.dot(pooled.astype(jnp.bfloat16), fold_w[...],
                preferred_element_type=jnp.float32)         # (Bt, cls_out)
    if apply_sigmoid:
        y = jax.nn.sigmoid(y)
    o_ref[...] = y.reshape(o_ref.shape).astype(o_ref.dtype)


# -------------------------------- wrapper -------------------------------------

def _prep_conv_w(w, scale=1.0):
    """(C_out, C_in, K) PyTorch conv weight -> (K, C_in, C_out) bf16 taps."""
    wt = jnp.transpose(jnp.asarray(w, jnp.float32) * scale, (2, 1, 0))
    return wt.astype(jnp.bfloat16)


def _pick_batch_tile(B, L, rows_target=128):
    """Largest divisor Bt of B with Bt*L <= rows_target; keep >=2 grid steps
    when possible so both v7x TensorCores get work."""
    divisors = [d for d in range(1, B + 1) if B % d == 0]
    cand = [d for d in divisors if d * L <= rows_target] or [1]
    bt = max(cand)
    if B >= 2 and B // bt < 2:
        smaller = [d for d in cand if B // d >= 2]
        if smaller:
            bt = max(smaller)
    return bt


def tcn_forward(params, x, *, dilation_sizes, input_scaling, output_size):
    B, C0, L = x.shape
    # One-time NCL -> NLC layout prep (L on sublanes, C on lanes); all causal
    # padding / shifting happens inside the kernel in registers.
    x_nlc = jnp.transpose(x, (0, 2, 1))

    s = float(input_scaling)
    blk0_has_ds = "wd" in params["blocks"][0]
    fold_scale = (s != 1.0) and blk0_has_ds        # conv(s*x, w) == conv(x, s*w)
    in_scale = None if (s == 1.0 or fold_scale) else s

    bt = _pick_batch_tile(B, L)

    block_cfgs = []
    flat_args = []
    in_specs = [pl.BlockSpec((bt, L, C0), lambda b: (b, 0, 0))]

    def _const_spec(shape):
        return pl.BlockSpec(shape, lambda b: (0,) * len(shape))

    def add_w(arr):
        flat_args.append(arr)
        in_specs.append(_const_spec(arr.shape))

    for i, blk in enumerate(params["blocks"]):
        K = blk["w1"].shape[2]
        d = int(dilation_sizes[i])
        has_ds = "wd" in blk
        block_cfgs.append((K, d, has_ds))
        w_scale = s if (fold_scale and i == 0) else 1.0
        add_w(_prep_conv_w(blk["w1"], w_scale))
        add_w(blk["b1"].astype(jnp.float32).reshape(1, -1))
        add_w(_prep_conv_w(blk["w2"]))
        add_w(blk["b2"].astype(jnp.float32).reshape(1, -1))
        if has_ds:
            add_w(_prep_conv_w(blk["wd"], w_scale))
            add_w(blk["bd"].astype(jnp.float32).reshape(1, -1))

    # lin1 -> lin2 -> classifier are bias-free with no nonlinearity between
    # (dropout = identity at inference): fold into one (C_last, cls_out) matrix.
    fold_w = (params["w_cls"] @ params["w_lin2"] @ params["w_lin1"]).T
    add_w(fold_w.astype(jnp.bfloat16))
    cls_out = fold_w.shape[1]

    kernel = functools.partial(
        _tcn_fused_kernel,
        block_cfgs=tuple(block_cfgs),
        in_scale=in_scale,
        apply_sigmoid=(output_size == 2))

    out = pl.pallas_call(
        kernel,
        out_shape=jax.ShapeDtypeStruct((B, 1, cls_out), jnp.float32),
        grid=(B // bt,),
        in_specs=in_specs,
        out_specs=pl.BlockSpec((bt, 1, cls_out), lambda b: (b, 0, 0)),
        compiler_params=pltpu.CompilerParams(
            dimension_semantics=("parallel",),
            # Footprint here is tiny; set explicitly and re-derive before
            # scaling L / channels (v7x has only 64 MiB physical VMEM).
            vmem_limit_bytes=32 * 1024 * 1024),
    )(x_nlc, *flat_args)
    return out.reshape(B, cls_out)


# --------------------------- params & reference --------------------------------

def init_params(key, input_size, output_size, kernel_sizes, num_channels):
    params = {"blocks": []}
    in_ch = input_size
    for i, out_ch in enumerate(num_channels):
        k = kernel_sizes[i]
        key, k1, k2, k3, k4, k5, k6 = jax.random.split(key, 7)
        blk = {
            "w1": jax.random.normal(k1, (out_ch, in_ch, k), jnp.float32) * 0.1,
            "b1": jax.random.normal(k2, (out_ch,), jnp.float32) * 0.05,
            "w2": jax.random.normal(k3, (out_ch, out_ch, k), jnp.float32) * 0.1,
            "b2": jax.random.normal(k4, (out_ch,), jnp.float32) * 0.05,
        }
        if in_ch != out_ch:  # residual 1x1 downsample conv
            blk["wd"] = jax.random.normal(k5, (out_ch, in_ch, 1), jnp.float32) * 0.1
            blk["bd"] = jax.random.normal(k6, (out_ch,), jnp.float32) * 0.05
        params["blocks"].append(blk)
        in_ch = out_ch
    c = num_channels[-1]
    key, k1, k2, k3 = jax.random.split(key, 4)
    params["w_lin1"] = jax.random.normal(k1, (2 * c, c), jnp.float32) * 0.1
    params["w_lin2"] = jax.random.normal(k2, (4 * c, 2 * c), jnp.float32) * 0.1
    cls_out = output_size if output_size > 2 else 1
    params["w_cls"] = jax.random.normal(k3, (cls_out, 4 * c), jnp.float32) * 0.1
    return params


def ref_forward(params, x, *, dilation_sizes, input_scaling, output_size):
    def conv(h, w, b, d):
        C_out, C_in, K = w.shape
        pad = (K - 1) * d
        hp = jnp.pad(h, ((0, 0), (0, 0), (pad, 0)))
        L = h.shape[-1]
        out = jnp.zeros((h.shape[0], C_out, L), jnp.float32)
        for k in range(K):
            out = out + jnp.einsum('oc,bcl->bol', w[:, :, k],
                                   hp[:, :, k * d:k * d + L])
        return out + b[None, :, None]

    h = x * input_scaling
    for i, blk in enumerate(params["blocks"]):
        d = dilation_sizes[i]
        o1 = jax.nn.relu(conv(h, blk["w1"], blk["b1"], d))
        o2 = jax.nn.relu(conv(o1, blk["w2"], blk["b2"], d))
        res = conv(h, blk["wd"], blk["bd"], 1) if "wd" in blk else h
        h = jax.nn.relu(o2 + res)
    pooled = jnp.max(h, axis=-1)
    y = pooled @ params["w_lin1"].T @ params["w_lin2"].T @ params["w_cls"].T
    if output_size == 2:
        y = jax.nn.sigmoid(y)
    return y


# ----------------------------------- main --------------------------------------

if __name__ == "__main__":
    input_size = 4
    output_size = 2            # -> classifier output dim 1 + sigmoid
    kernel_sizes = [3, 3]
    dilation_sizes = [1, 2]
    input_scaling = 0.5        # exercises the weight-fold of the input scale
    num_channels = [8, 16]
    B, L = 8, 16               # Bt=4 -> grid=(2,), 64 matmul rows per step

    key = jax.random.PRNGKey(0)
    pkey, xkey = jax.random.split(key)
    params = init_params(pkey, input_size, output_size, kernel_sizes, num_channels)
    x = jax.random.normal(xkey, (B, input_size, L), jnp.float32)

    out = tcn_forward(params, x, dilation_sizes=dilation_sizes,
                      input_scaling=input_scaling, output_size=output_size)
    out = jax.block_until_ready(out)

    ref = ref_forward(params, x, dilation_sizes=dilation_sizes,
                      input_scaling=input_scaling, output_size=output_size)
    assert out.shape == (B, 1), out.shape
    # bf16 MXU operands -> widened tolerance vs the f32 reference.
    assert bool(jnp.allclose(out, ref, atol=2e-2, rtol=2e-2)), (out, ref)

    print("KERNEL_OK")
</pallas_src>

<mosaic_0001>
module attributes {stable_mosaic.version = 11 : i64} {
  func.func @_tcn_fused_kernel(%arg0: i32, %arg1: memref<4x16x4xf32, #tpu.memory_space<vmem>>, %arg2: memref<3x4x8xbf16, #tpu.memory_space<vmem>>, %arg3: memref<1x8xf32, #tpu.memory_space<vmem>>, %arg4: memref<3x8x8xbf16, #tpu.memory_space<vmem>>, %arg5: memref<1x8xf32, #tpu.memory_space<vmem>>, %arg6: memref<1x4x8xbf16, #tpu.memory_space<vmem>>, %arg7: memref<1x8xf32, #tpu.memory_space<vmem>>, %arg8: memref<3x8x16xbf16, #tpu.memory_space<vmem>>, %arg9: memref<1x16xf32, #tpu.memory_space<vmem>>, %arg10: memref<3x16x16xbf16, #tpu.memory_space<vmem>>, %arg11: memref<1x16xf32, #tpu.memory_space<vmem>>, %arg12: memref<1x8x16xbf16, #tpu.memory_space<vmem>>, %arg13: memref<1x16xf32, #tpu.memory_space<vmem>>, %arg14: memref<16x1xbf16, #tpu.memory_space<vmem>>, %arg15: memref<4x1x1xf32, #tpu.memory_space<vmem>>) attributes {dimension_semantics = [#tpu.dimension_semantics<parallel>], iteration_bounds = array<i64: 2>, scalar_prefetch = 0 : i64, scratch_operands = 0 : i64, tpu.core_type = #tpu.core_type<tc>, window_params = [{transform_indices = @transform_0, window_bounds = array<i64: 4, 16, 4>}, {pipeline_mode = #tpu.pipeline_mode<synchronous>, transform_indices = @transform_1, window_bounds = array<i64: 3, 4, 8>}, {pipeline_mode = #tpu.pipeline_mode<synchronous>, transform_indices = @transform_2, window_bounds = array<i64: 1, 8>}, {pipeline_mode = #tpu.pipeline_mode<synchronous>, transform_indices = @transform_3, window_bounds = array<i64: 3, 8, 8>}, {pipeline_mode = #tpu.pipeline_mode<synchronous>, transform_indices = @transform_4, window_bounds = array<i64: 1, 8>}, {pipeline_mode = #tpu.pipeline_mode<synchronous>, transform_indices = @transform_5, window_bounds = array<i64: 1, 4, 8>}, {pipeline_mode = #tpu.pipeline_mode<synchronous>, transform_indices = @transform_6, window_bounds = array<i64: 1, 8>}, {pipeline_mode = #tpu.pipeline_mode<synchronous>, transform_indices = @transform_7, window_bounds = array<i64: 3, 8, 16>}, {pipeline_mode = #tpu.pipeline_mode<synchronous>, transform_indices = @transform_8, window_bounds = array<i64: 1, 16>}, {pipeline_mode = #tpu.pipeline_mode<synchronous>, transform_indices = @transform_9, window_bounds = array<i64: 3, 16, 16>}, {pipeline_mode = #tpu.pipeline_mode<synchronous>, transform_indices = @transform_10, window_bounds = array<i64: 1, 16>}, {pipeline_mode = #tpu.pipeline_mode<synchronous>, transform_indices = @transform_11, window_bounds = array<i64: 1, 8, 16>}, {pipeline_mode = #tpu.pipeline_mode<synchronous>, transform_indices = @transform_12, window_bounds = array<i64: 1, 16>}, {pipeline_mode = #tpu.pipeline_mode<synchronous>, transform_indices = @transform_13, window_bounds = array<i64: 16, 1>}, {transform_indices = @transform_14, window_bounds = array<i64: 4, 1, 1>}]} {
    %c0 = arith.constant 0 : index
    %c0_0 = arith.constant 0 : index
    %c0_1 = arith.constant 0 : index
    %0 = vector.load %arg1[%c0, %c0_0, %c0_1] : memref<4x16x4xf32, #tpu.memory_space<vmem>>, vector<4x16x4xf32>
    %cst = arith.constant 0.000000e+00 : f32
    %1 = vector.broadcast %cst : f32 to vector<4x2x4xf32>
    %2 = vector.extract_strided_slice %0 {offsets = [0, 0, 0], sizes = [4, 14, 4], strides = [1, 1, 1]} : vector<4x16x4xf32> to vector<4x14x4xf32>
    %3 = tpu.concatenate %1, %2 in 1 : vector<4x2x4xf32>, vector<4x14x4xf32> -> vector<4x16x4xf32>
    %4 = vector.shape_cast %3 : vector<4x16x4xf32> to vector<64x4xf32>
    %5 = arith.truncf %4 : vector<64x4xf32> to vector<64x4xbf16>
    %c0_2 = arith.constant 0 : index
    %c0_3 = arith.constant 0 : index
    %c0_4 = arith.constant 0 : index
    %6 = vector.load %arg2[%c0_2, %c0_3, %c0_4] : memref<3x4x8xbf16, #tpu.memory_space<vmem>>, vector<1x4x8xbf16>
    %7 = vector.shape_cast %6 : vector<1x4x8xbf16> to vector<4x8xbf16>
    %cst_5 = arith.constant dense<0.000000e+00> : vector<64x8xf32>
    %8 = tpu.matmul %5, %7, %cst_5 {dimension_numbers = #tpu.dot_dimension_numbers<[1], [0], [0], [1], [0, 0, 1, 1], [], []>} : vector<64x4xbf16>, vector<4x8xbf16>, vector<64x8xf32> -> vector<64x8xf32>
    %cst_6 = arith.constant 0.000000e+00 : f32
    %9 = vector.broadcast %cst_6 : f32 to vector<4x1x4xf32>
    %10 = vector.extract_strided_slice %0 {offsets = [0, 0, 0], sizes = [4, 15, 4], strides = [1, 1, 1]} : vector<4x16x4xf32> to vector<4x15x4xf32>
    %11 = tpu.concatenate %9, %10 in 1 : vector<4x1x4xf32>, vector<4x15x4xf32> -> vector<4x16x4xf32>
    %12 = vector.shape_cast %11 : vector<4x16x4xf32> to vector<64x4xf32>
    %13 = arith.truncf %12 : vector<64x4xf32> to vector<64x4xbf16>
    %c1 = arith.constant 1 : index
    %c0_7 = arith.constant 0 : index
    %c0_8 = arith.constant 0 : index
    %14 = vector.load %arg2[%c1, %c0_7, %c0_8] : memref<3x4x8xbf16, #tpu.memory_space<vmem>>, vector<1x4x8xbf16>
    %15 = vector.shape_cast %14 : vector<1x4x8xbf16> to vector<4x8xbf16>
    %cst_9 = arith.constant dense<0.000000e+00> : vector<64x8xf32>
    %16 = tpu.matmul %13, %15, %cst_9 {dimension_numbers = #tpu.dot_dimension_numbers<[1], [0], [0], [1], [0, 0, 1, 1], [], []>} : vector<64x4xbf16>, vector<4x8xbf16>, vector<64x8xf32> -> vector<64x8xf32>
    %17 = arith.addf %8, %16 : vector<64x8xf32>
    %18 = vector.shape_cast %0 : vector<4x16x4xf32> to vector<64x4xf32>
    %19 = arith.truncf %18 : vector<64x4xf32> to vector<64x4xbf16>
    %c2 = arith.constant 2 : index
    %c0_10 = arith.constant 0 : index
    %c0_11 = arith.constant 0 : index
    %20 = vector.load %arg2[%c2, %c0_10, %c0_11] : memref<3x4x8xbf16, #tpu.memory_space<vmem>>, vector<1x4x8xbf16>
    %21 = vector.shape_cast %20 : vector<1x4x8xbf16> to vector<4x8xbf16>
    %cst_12 = arith.constant dense<0.000000e+00> : vector<64x8xf32>
    %22 = tpu.matmul %19, %21, %cst_12 {dimension_numbers = #tpu.dot_dimension_numbers<[1], [0], [0], [1], [0, 0, 1, 1], [], []>} : vector<64x4xbf16>, vector<4x8xbf16>, vector<64x8xf32> -> vector<64x8xf32>
    %23 = arith.addf %17, %22 : vector<64x8xf32>
    %c0_13 = arith.constant 0 : index
    %c0_14 = arith.constant 0 : index
    %24 = vector.load %arg3[%c0_13, %c0_14] : memref<1x8xf32, #tpu.memory_space<vmem>>, vector<1x8xf32>
    %25 = vector.broadcast %24 : vector<1x8xf32> to vector<64x8xf32>
    %26 = arith.addf %23, %25 : vector<64x8xf32>
    %27 = vector.shape_cast %26 : vector<64x8xf32> to vector<4x16x8xf32>
    %cst_15 = arith.constant 0.000000e+00 : f32
    %28 = vector.broadcast %cst_15 : f32 to vector<4x16x8xf32>
    %29 = arith.maximumf %27, %28 : vector<4x16x8xf32>
    %cst_16 = arith.constant 0.000000e+00 : f32
    %30 = vector.broadcast %cst_16 : f32 to vector<4x2x8xf32>
    %31 = vector.extract_strided_slice %29 {offsets = [0, 0, 0], sizes = [4, 14, 8], strides = [1, 1, 1]} : vector<4x16x8xf32> to vector<4x14x8xf32>
    %32 = tpu.concatenate %30, %31 in 1 : vector<4x2x8xf32>, vector<4x14x8xf32> -> vector<4x16x8xf32>
    %33 = vector.shape_cast %32 : vector<4x16x8xf32> to vector<64x8xf32>
    %34 = arith.truncf %33 : vector<64x8xf32> to vector<64x8xbf16>
    %c0_17 = arith.constant 0 : index
    %c0_18 = arith.constant 0 : index
    %c0_19 = arith.constant 0 : index
    %35 = vector.load %arg4[%c0_17, %c0_18, %c0_19] : memref<3x8x8xbf16, #tpu.memory_space<vmem>>, vector<1x8x8xbf16>
    %36 = vector.shape_cast %35 : vector<1x8x8xbf16> to vector<8x8xbf16>
    %cst_20 = arith.constant dense<0.000000e+00> : vector<64x8xf32>
    %37 = tpu.matmul %34, %36, %cst_20 {dimension_numbers = #tpu.dot_dimension_numbers<[1], [0], [0], [1], [0, 0, 1, 1], [], []>} : vector<64x8xbf16>, vector<8x8xbf16>, vector<64x8xf32> -> vector<64x8xf32>
    %cst_21 = arith.constant 0.000000e+00 : f32
    %38 = vector.broadcast %cst_21 : f32 to vector<4x1x8xf32>
    %39 = vector.extract_strided_slice %29 {offsets = [0, 0, 0], sizes = [4, 15, 8], strides = [1, 1, 1]} : vector<4x16x8xf32> to vector<4x15x8xf32>
    %40 = tpu.concatenate %38, %39 in 1 : vector<4x1x8xf32>, vector<4x15x8xf32> -> vector<4x16x8xf32>
    %41 = vector.shape_cast %40 : vector<4x16x8xf32> to vector<64x8xf32>
    %42 = arith.truncf %41 : vector<64x8xf32> to vector<64x8xbf16>
    %c1_22 = arith.constant 1 : index
    %c0_23 = arith.constant 0 : index
    %c0_24 = arith.constant 0 : index
    %43 = vector.load %arg4[%c1_22, %c0_23, %c0_24] : memref<3x8x8xbf16, #tpu.memory_space<vmem>>, vector<1x8x8xbf16>
    %44 = vector.shape_cast %43 : vector<1x8x8xbf16> to vector<8x8xbf16>
    %cst_25 = arith.constant dense<0.000000e+00> : vector<64x8xf32>
    %45 = tpu.matmul %42, %44, %cst_25 {dimension_numbers = #tpu.dot_dimension_numbers<[1], [0], [0], [1], [0, 0, 1, 1], [], []>} : vector<64x8xbf16>, vector<8x8xbf16>, vector<64x8xf32> -> vector<64x8xf32>
    %46 = arith.addf %37, %45 : vector<64x8xf32>
    %47 = vector.shape_cast %29 : vector<4x16x8xf32> to vector<64x8xf32>
    %48 = arith.truncf %47 : vector<64x8xf32> to vector<64x8xbf16>
    %c2_26 = arith.constant 2 : index
    %c0_27 = arith.constant 0 : index
    %c0_28 = arith.constant 0 : index
    %49 = vector.load %arg4[%c2_26, %c0_27, %c0_28] : memref<3x8x8xbf16, #tpu.memory_space<vmem>>, vector<1x8x8xbf16>
    %50 = vector.shape_cast %49 : vector<1x8x8xbf16> to vector<8x8xbf16>
    %cst_29 = arith.constant dense<0.000000e+00> : vector<64x8xf32>
    %51 = tpu.matmul %48, %50, %cst_29 {dimension_numbers = #tpu.dot_dimension_numbers<[1], [0], [0], [1], [0, 0, 1, 1], [], []>} : vector<64x8xbf16>, vector<8x8xbf16>, vector<64x8xf32> -> vector<64x8xf32>
    %52 = arith.addf %46, %51 : vector<64x8xf32>
    %c0_30 = arith.constant 0 : index
    %c0_31 = arith.constant 0 : index
    %53 = vector.load %arg5[%c0_30, %c0_31] : memref<1x8xf32, #tpu.memory_space<vmem>>, vector<1x8xf32>
    %54 = vector.broadcast %53 : vector<1x8xf32> to vector<64x8xf32>
    %55 = arith.addf %52, %54 : vector<64x8xf32>
    %56 = vector.shape_cast %55 : vector<64x8xf32> to vector<4x16x8xf32>
    %cst_32 = arith.constant 0.000000e+00 : f32
    %57 = vector.broadcast %cst_32 : f32 to vector<4x16x8xf32>
    %58 = arith.maximumf %56, %57 : vector<4x16x8xf32>
    %59 = vector.shape_cast %0 : vector<4x16x4xf32> to vector<64x4xf32>
    %60 = arith.truncf %59 : vector<64x4xf32> to vector<64x4xbf16>
    %c0_33 = arith.constant 0 : index
    %c0_34 = arith.constant 0 : index
    %c0_35 = arith.constant 0 : index
    %61 = vector.load %arg6[%c0_33, %c0_34, %c0_35] : memref<1x4x8xbf16, #tpu.memory_space<vmem>>, vector<1x4x8xbf16>
    %62 = vector.shape_cast %61 : vector<1x4x8xbf16> to vector<4x8xbf16>
    %cst_36 = arith.constant dense<0.000000e+00> : vector<64x8xf32>
    %63 = tpu.matmul %60, %62, %cst_36 {dimension_numbers = #tpu.dot_dimension_numbers<[1], [0], [0], [1], [0, 0, 1, 1], [], []>} : vector<64x4xbf16>, vector<4x8xbf16>, vector<64x8xf32> -> vector<64x8xf32>
    %c0_37 = arith.constant 0 : index
    %c0_38 = arith.constant 0 : index
    %64 = vector.load %arg7[%c0_37, %c0_38] : memref<1x8xf32, #tpu.memory_space<vmem>>, vector<1x8xf32>
    %65 = vector.broadcast %64 : vector<1x8xf32> to vector<64x8xf32>
    %66 = arith.addf %63, %65 : vector<64x8xf32>
    %67 = vector.shape_cast %66 : vector<64x8xf32> to vector<4x16x8xf32>
    %68 = arith.addf %58, %67 : vector<4x16x8xf32>
    %cst_39 = arith.constant 0.000000e+00 : f32
    %69 = vector.broadcast %cst_39 : f32 to vector<4x16x8xf32>
    %70 = arith.maximumf %68, %69 : vector<4x16x8xf32>
    %cst_40 = arith.constant 0.000000e+00 : f32
    %71 = vector.broadcast %cst_40 : f32 to vector<4x4x8xf32>
    %72 = vector.extract_strided_slice %70 {offsets = [0, 0, 0], sizes = [4, 12, 8], strides = [1, 1, 1]} : vector<4x16x8xf32> to vector<4x12x8xf32>
    %73 = tpu.concatenate %71, %72 in 1 : vector<4x4x8xf32>, vector<4x12x8xf32> -> vector<4x16x8xf32>
    %74 = vector.shape_cast %73 : vector<4x16x8xf32> to vector<64x8xf32>
    %75 = arith.truncf %74 : vector<64x8xf32> to vector<64x8xbf16>
    %c0_41 = arith.constant 0 : index
    %c0_42 = arith.constant 0 : index
    %c0_43 = arith.constant 0 : index
    %76 = vector.load %arg8[%c0_41, %c0_42, %c0_43] : memref<3x8x16xbf16, #tpu.memory_space<vmem>>, vector<1x8x16xbf16>
    %77 = vector.shape_cast %76 : vector<1x8x16xbf16> to vector<8x16xbf16>
    %cst_44 = arith.constant dense<0.000000e+00> : vector<64x16xf32>
    %78 = tpu.matmul %75, %77, %cst_44 {dimension_numbers = #tpu.dot_dimension_numbers<[1], [0], [0], [1], [0, 0, 1, 1], [], []>} : vector<64x8xbf16>, vector<8x16xbf16>, vector<64x16xf32> -> vector<64x16xf32>
    %cst_45 = arith.constant 0.000000e+00 : f32
    %79 = vector.broadcast %cst_45 : f32 to vector<4x2x8xf32>
    %80 = vector.extract_strided_slice %70 {offsets = [0, 0, 0], sizes = [4, 14, 8], strides = [1, 1, 1]} : vector<4x16x8xf32> to vector<4x14x8xf32>
    %81 = tpu.concatenate %79, %80 in 1 : vector<4x2x8xf32>, vector<4x14x8xf32> -> vector<4x16x8xf32>
    %82 = vector.shape_cast %81 : vector<4x16x8xf32> to vector<64x8xf32>
    %83 = arith.truncf %82 : vector<64x8xf32> to vector<64x8xbf16>
    %c1_46 = arith.constant 1 : index
    %c0_47 = arith.constant 0 : index
    %c0_48 = arith.constant 0 : index
    %84 = vector.load %arg8[%c1_46, %c0_47, %c0_48] : memref<3x8x16xbf16, #tpu.memory_space<vmem>>, vector<1x8x16xbf16>
    %85 = vector.shape_cast %84 : vector<1x8x16xbf16> to vector<8x16xbf16>
    %cst_49 = arith.constant dense<0.000000e+00> : vector<64x16xf32>
    %86 = tpu.matmul %83, %85, %cst_49 {dimension_numbers = #tpu.dot_dimension_numbers<[1], [0], [0], [1], [0, 0, 1, 1], [], []>} : vector<64x8xbf16>, vector<8x16xbf16>, vector<64x16xf32> -> vector<64x16xf32>
    %87 = arith.addf %78, %86 : vector<64x16xf32>
    %88 = vector.shape_cast %70 : vector<4x16x8xf32> to vector<64x8xf32>
    %89 = arith.truncf %88 : vector<64x8xf32> to vector<64x8xbf16>
    %c2_50 = arith.constant 2 : index
    %c0_51 = arith.constant 0 : index
    %c0_52 = arith.constant 0 : index
    %90 = vector.load %arg8[%c2_50, %c0_51, %c0_52] : memref<3x8x16xbf16, #tpu.memory_space<vmem>>, vector<1x8x16xbf16>
    %91 = vector.shape_cast %90 : vector<1x8x16xbf16> to vector<8x16xbf16>
    %cst_53 = arith.constant dense<0.000000e+00> : vector<64x16xf32>
    %92 = tpu.matmul %89, %91, %cst_53 {dimension_numbers = #tpu.dot_dimension_numbers<[1], [0], [0], [1], [0, 0, 1, 1], [], []>} : vector<64x8xbf16>, vector<8x16xbf16>, vector<64x16xf32> -> vector<64x16xf32>
    %93 = arith.addf %87, %92 : vector<64x16xf32>
    %c0_54 = arith.constant 0 : index
    %c0_55 = arith.constant 0 : index
    %94 = vector.load %arg9[%c0_54, %c0_55] : memref<1x16xf32, #tpu.memory_space<vmem>>, vector<1x16xf32>
    %95 = vector.broadcast %94 : vector<1x16xf32> to vector<64x16xf32>
    %96 = arith.addf %93, %95 : vector<64x16xf32>
    %97 = vector.shape_cast %96 : vector<64x16xf32> to vector<4x16x16xf32>
    %cst_56 = arith.constant 0.000000e+00 : f32
    %98 = vector.broadcast %cst_56 : f32 to vector<4x16x16xf32>
    %99 = arith.maximumf %97, %98 : vector<4x16x16xf32>
    %cst_57 = arith.constant 0.000000e+00 : f32
    %100 = vector.broadcast %cst_57 : f32 to vector<4x4x16xf32>
    %101 = vector.extract_strided_slice %99 {offsets = [0, 0, 0], sizes = [4, 12, 16], strides = [1, 1, 1]} : vector<4x16x16xf32> to vector<4x12x16xf32>
    %102 = tpu.concatenate %100, %101 in 1 : vector<4x4x16xf32>, vector<4x12x16xf32> -> vector<4x16x16xf32>
    %103 = vector.shape_cast %102 : vector<4x16x16xf32> to vector<64x16xf32>
    %104 = arith.truncf %103 : vector<64x16xf32> to vector<64x16xbf16>
    %c0_58 = arith.constant 0 : index
    %c0_59 = arith.constant 0 : index
    %c0_60 = arith.constant 0 : index
    %105 = vector.load %arg10[%c0_58, %c0_59, %c0_60] : memref<3x16x16xbf16, #tpu.memory_space<vmem>>, vector<1x16x16xbf16>
    %106 = vector.shape_cast %105 : vector<1x16x16xbf16> to vector<16x16xbf16>
    %cst_61 = arith.constant dense<0.000000e+00> : vector<64x16xf32>
    %107 = tpu.matmul %104, %106, %cst_61 {dimension_numbers = #tpu.dot_dimension_numbers<[1], [0], [0], [1], [0, 0, 1, 1], [], []>} : vector<64x16xbf16>, vector<16x16xbf16>, vector<64x16xf32> -> vector<64x16xf32>
    %cst_62 = arith.constant 0.000000e+00 : f32
    %108 = vector.broadcast %cst_62 : f32 to vector<4x2x16xf32>
    %109 = vector.extract_strided_slice %99 {offsets = [0, 0, 0], sizes = [4, 14, 16], strides = [1, 1, 1]} : vector<4x16x16xf32> to vector<4x14x16xf32>
    %110 = tpu.concatenate %108, %109 in 1 : vector<4x2x16xf32>, vector<4x14x16xf32> -> vector<4x16x16xf32>
    %111 = vector.shape_cast %110 : vector<4x16x16xf32> to vector<64x16xf32>
    %112 = arith.truncf %111 : vector<64x16xf32> to vector<64x16xbf16>
    %c1_63 = arith.constant 1 : index
    %c0_64 = arith.constant 0 : index
    %c0_65 = arith.constant 0 : index
    %113 = vector.load %arg10[%c1_63, %c0_64, %c0_65] : memref<3x16x16xbf16, #tpu.memory_space<vmem>>, vector<1x16x16xbf16>
    %114 = vector.shape_cast %113 : vector<1x16x16xbf16> to vector<16x16xbf16>
    %cst_66 = arith.constant dense<0.000000e+00> : vector<64x16xf32>
    %115 = tpu.matmul %112, %114, %cst_66 {dimension_numbers = #tpu.dot_dimension_numbers<[1], [0], [0], [1], [0, 0, 1, 1], [], []>} : vector<64x16xbf16>, vector<16x16xbf16>, vector<64x16xf32> -> vector<64x16xf32>
    %116 = arith.addf %107, %115 : vector<64x16xf32>
    %117 = vector.shape_cast %99 : vector<4x16x16xf32> to vector<64x16xf32>
    %118 = arith.truncf %117 : vector<64x16xf32> to vector<64x16xbf16>
    %c2_67 = arith.constant 2 : index
    %c0_68 = arith.constant 0 : index
    %c0_69 = arith.constant 0 : index
    %119 = vector.load %arg10[%c2_67, %c0_68, %c0_69] : memref<3x16x16xbf16, #tpu.memory_space<vmem>>, vector<1x16x16xbf16>
    %120 = vector.shape_cast %119 : vector<1x16x16xbf16> to vector<16x16xbf16>
    %cst_70 = arith.constant dense<0.000000e+00> : vector<64x16xf32>
    %121 = tpu.matmul %118, %120, %cst_70 {dimension_numbers = #tpu.dot_dimension_numbers<[1], [0], [0], [1], [0, 0, 1, 1], [], []>} : vector<64x16xbf16>, vector<16x16xbf16>, vector<64x16xf32> -> vector<64x16xf32>
    %122 = arith.addf %116, %121 : vector<64x16xf32>
    %c0_71 = arith.constant 0 : index
    %c0_72 = arith.constant 0 : index
    %123 = vector.load %arg11[%c0_71, %c0_72] : memref<1x16xf32, #tpu.memory_space<vmem>>, vector<1x16xf32>
    %124 = vector.broadcast %123 : vector<1x16xf32> to vector<64x16xf32>
    %125 = arith.addf %122, %124 : vector<64x16xf32>
    %126 = vector.shape_cast %125 : vector<64x16xf32> to vector<4x16x16xf32>
    %cst_73 = arith.constant 0.000000e+00 : f32
    %127 = vector.broadcast %cst_73 : f32 to vector<4x16x16xf32>
    %128 = arith.maximumf %126, %127 : vector<4x16x16xf32>
    %129 = vector.shape_cast %70 : vector<4x16x8xf32> to vector<64x8xf32>
    %130 = arith.truncf %129 : vector<64x8xf32> to vector<64x8xbf16>
    %c0_74 = arith.constant 0 : index
    %c0_75 = arith.constant 0 : index
    %c0_76 = arith.constant 0 : index
    %131 = vector.load %arg12[%c0_74, %c0_75, %c0_76] : memref<1x8x16xbf16, #tpu.memory_space<vmem>>, vector<1x8x16xbf16>
    %132 = vector.shape_cast %131 : vector<1x8x16xbf16> to vector<8x16xbf16>
    %cst_77 = arith.constant dense<0.000000e+00> : vector<64x16xf32>
    %133 = tpu.matmul %130, %132, %cst_77 {dimension_numbers = #tpu.dot_dimension_numbers<[1], [0], [0], [1], [0, 0, 1, 1], [], []>} : vector<64x8xbf16>, vector<8x16xbf16>, vector<64x16xf32> -> vector<64x16xf32>
    %c0_78 = arith.constant 0 : index
    %c0_79 = arith.constant 0 : index
    %134 = vector.load %arg13[%c0_78, %c0_79] : memref<1x16xf32, #tpu.memory_space<vmem>>, vector<1x16xf32>
    %135 = vector.broadcast %134 : vector<1x16xf32> to vector<64x16xf32>
    %136 = arith.addf %133, %135 : vector<64x16xf32>
    %137 = vector.shape_cast %136 : vector<64x16xf32> to vector<4x16x16xf32>
    %138 = arith.addf %128, %137 : vector<4x16x16xf32>
    %cst_80 = arith.constant 0.000000e+00 : f32
    %139 = vector.broadcast %cst_80 : f32 to vector<4x16x16xf32>
    %140 = arith.maximumf %138, %139 : vector<4x16x16xf32>
    %cst_81 = arith.constant dense<0xFF800000> : vector<4x16xf32>
    %141 = vector.multi_reduction <maximumf>, %140, %cst_81 [1] : vector<4x16x16xf32> to vector<4x16xf32>
    %142 = arith.truncf %141 : vector<4x16xf32> to vector<4x16xbf16>
    %c0_82 = arith.constant 0 : index
    %c0_83 = arith.constant 0 : index
    %143 = vector.load %arg14[%c0_82, %c0_83] : memref<16x1xbf16, #tpu.memory_space<vmem>>, vector<16x1xbf16>
    %cst_84 = arith.constant dense<0.000000e+00> : vector<4x1xf32>
    %144 = tpu.matmul %142, %143, %cst_84 {dimension_numbers = #tpu.dot_dimension_numbers<[1], [0], [0], [1], [0, 0, 1, 1], [], []>} : vector<4x16xbf16>, vector<16x1xbf16>, vector<4x1xf32> -> vector<4x1xf32>
    %145 = arith.negf %144 : vector<4x1xf32>
    %146 = math.exp %145 : vector<4x1xf32>
    %cst_85 = arith.constant 1.000000e+00 : f32
    %147 = vector.broadcast %cst_85 : f32 to vector<4x1xf32>
    %148 = arith.addf %147, %146 : vector<4x1xf32>
    %149 = arith.divf %147, %148 : vector<4x1xf32>
    %150 = vector.shape_cast %149 : vector<4x1xf32> to vector<4x1x1xf32>
    %c0_86 = arith.constant 0 : index
    %c0_87 = arith.constant 0 : index
    %c0_88 = arith.constant 0 : index
    %151 = vector.load %arg15[%c0_86, %c0_87, %c0_88] : memref<4x1x1xf32, #tpu.memory_space<vmem>>, vector<4x1x1xf32>
    tpu.vector_store %arg15[%c0_86, %c0_87, %c0_88], %150 {strides = array<i32>} : memref<4x1x1xf32, #tpu.memory_space<vmem>>, vector<4x1x1xf32>,
    return
  }
  func.func @transform_0(%arg0: i32) -> (i32, i32, i32) {
    %c0_i32 = arith.constant 0 : i32
    %c0_i32_0 = arith.constant 0 : i32
    %c0_i32_1 = arith.constant 0 : i32
    return %arg0, %c0_i32, %c0_i32_0 : i32, i32, i32
  }
  func.func @transform_1(%arg0: i32) -> (i32, i32, i32) {
    %c0_i32 = arith.constant 0 : i32
    %c0_i32_0 = arith.constant 0 : i32
    %c0_i32_1 = arith.constant 0 : i32
    %c0_i32_2 = arith.constant 0 : i32
    return %c0_i32, %c0_i32_0, %c0_i32_1 : i32, i32, i32
  }
  func.func @transform_2(%arg0: i32) -> (i32, i32) {
    %c0_i32 = arith.constant 0 : i32
    %c0_i32_0 = arith.constant 0 : i32
    %c0_i32_1 = arith.constant 0 : i32
    return %c0_i32, %c0_i32_0 : i32, i32
  }
  func.func @transform_3(%arg0: i32) -> (i32, i32, i32) {
    %c0_i32 = arith.constant 0 : i32
    %c0_i32_0 = arith.constant 0 : i32
    %c0_i32_1 = arith.constant 0 : i32
    %c0_i32_2 = arith.constant 0 : i32
    return %c0_i32, %c0_i32_0, %c0_i32_1 : i32, i32, i32
  }
  func.func @transform_4(%arg0: i32) -> (i32, i32) {
    %c0_i32 = arith.constant 0 : i32
    %c0_i32_0 = arith.constant 0 : i32
    %c0_i32_1 = arith.constant 0 : i32
    return %c0_i32, %c0_i32_0 : i32, i32
  }
  func.func @transform_5(%arg0: i32) -> (i32, i32, i32) {
    %c0_i32 = arith.constant 0 : i32
    %c0_i32_0 = arith.constant 0 : i32
    %c0_i32_1 = arith.constant 0 : i32
    %c0_i32_2 = arith.constant 0 : i32
    return %c0_i32, %c0_i32_0, %c0_i32_1 : i32, i32, i32
  }
  func.func @transform_6(%arg0: i32) -> (i32, i32) {
    %c0_i32 = arith.constant 0 : i32
    %c0_i32_0 = arith.constant 0 : i32
    %c0_i32_1 = arith.constant 0 : i32
    return %c0_i32, %c0_i32_0 : i32, i32
  }
  func.func @transform_7(%arg0: i32) -> (i32, i32, i32) {
    %c0_i32 = arith.constant 0 : i32
    %c0_i32_0 = arith.constant 0 : i32
    %c0_i32_1 = arith.constant 0 : i32
    %c0_i32_2 = arith.constant 0 : i32
    return %c0_i32, %c0_i32_0, %c0_i32_1 : i32, i32, i32
  }
  func.func @transform_8(%arg0: i32) -> (i32, i32) {
    %c0_i32 = arith.constant 0 : i32
    %c0_i32_0 = arith.constant 0 : i32
    %c0_i32_1 = arith.constant 0 : i32
    return %c0_i32, %c0_i32_0 : i32, i32
  }
  func.func @transform_9(%arg0: i32) -> (i32, i32, i32) {
    %c0_i32 = arith.constant 0 : i32
    %c0_i32_0 = arith.constant 0 : i32
    %c0_i32_1 = arith.constant 0 : i32
    %c0_i32_2 = arith.constant 0 : i32
    return %c0_i32, %c0_i32_0, %c0_i32_1 : i32, i32, i32
  }
  func.func @transform_10(%arg0: i32) -> (i32, i32) {
    %c0_i32 = arith.constant 0 : i32
    %c0_i32_0 = arith.constant 0 : i32
    %c0_i32_1 = arith.constant 0 : i32
    return %c0_i32, %c0_i32_0 : i32, i32
  }
  func.func @transform_11(%arg0: i32) -> (i32, i32, i32) {
    %c0_i32 = arith.constant 0 : i32
    %c0_i32_0 = arith.constant 0 : i32
    %c0_i32_1 = arith.constant 0 : i32
    %c0_i32_2 = arith.constant 0 : i32
    return %c0_i32, %c0_i32_0, %c0_i32_1 : i32, i32, i32
  }
  func.func @transform_12(%arg0: i32) -> (i32, i32) {
    %c0_i32 = arith.constant 0 : i32
    %c0_i32_0 = arith.constant 0 : i32
    %c0_i32_1 = arith.constant 0 : i32
    return %c0_i32, %c0_i32_0 : i32, i32
  }
  func.func @transform_13(%arg0: i32) -> (i32, i32) {
    %c0_i32 = arith.constant 0 : i32
    %c0_i32_0 = arith.constant 0 : i32
    %c0_i32_1 = arith.constant 0 : i32
    return %c0_i32, %c0_i32_0 : i32, i32
  }
  func.func @transform_14(%arg0: i32) -> (i32, i32, i32) {
    %c0_i32 = arith.constant 0 : i32
    %c0_i32_0 = arith.constant 0 : i32
    %c0_i32_1 = arith.constant 0 : i32
    return %arg0, %c0_i32, %c0_i32_0 : i32, i32, i32
  }
}

</mosaic_0001>

<bundles_post_ra>
// kernel: tpu_custom_call.1
= control target key start
LH: loop header
LB: loop body
LE: loop exit
PB: predicated region body
PF: predicated region fallthrough
CT: control target
= control target key end

     0   :  { %s2743_s29 = smov 0   ;;  %s3044_s0 = inlined_call_operand.vmem [shape: f32[8,16,4], index: 0, kind: input, shape index: {}]   ;;  %s3045_s1 = inlined_call_operand.vmem [shape: bf16[3,4,8], index: 1, kind: input, shape index: {}]   ;;  %s3046_s2 = inlined_call_operand.vmem [shape: f32[1,8], index: 2, kind: input, shape index: {}]   ;;  %s3047_s3 = inlined_call_operand.vmem [shape: bf16[3,8,8], index: 3, kind: input, shape index: {}]   ;;  %s3048_s4 = inlined_call_operand.vmem [shape: f32[1,8], index: 4, kind: input, shape index: {}]   ;;  %s3049_s5 = inlined_call_operand.vmem [shape: bf16[1,4,8], index: 5, kind: input, shape index: {}]   ;;  %s3050_s6 = inlined_call_operand.vmem [shape: f32[1,8], index: 6, kind: input, shape index: {}]   ;;  %s3051_s7 = inlined_call_operand.vmem [shape: bf16[3,8,16], index: 7, kind: input, shape index: {}]   ;;  %s3052_s8 = inlined_call_operand.vmem [shape: f32[1,16], index: 8, kind: input, shape index: {}]   ;;  %s3053_s9 = inlined_call_operand.vmem [shape: bf16[3,16,16], index: 9, kind: input, shape index: {}]   ;;  %s3054_s10 = inlined_call_operand.vmem [shape: f32[1,16], index: 10, kind: input, shape index: {}]   ;;  %s3055_s11 = inlined_call_operand.vmem [shape: bf16[1,8,16], index: 11, kind: input, shape index: {}]   ;;  %s3056_s12 = inlined_call_operand.vmem [shape: f32[1,16], index: 12, kind: input, shape index: {}]   ;;  %s3057_s13 = inlined_call_operand.vmem [shape: bf16[16,1], index: 13, kind: input, shape index: {}]   ;;  %s3058_s14 = inlined_call_operand.vmem [shape: f32[8,1,1], index: 14, kind: output, shape index: {}]  }
   0x1 LB: > { %s2255_s30 = sadd.s32 4294967295, %s2663_s29   ;;  %p2259_p0 = scmp.ge.s32.totalorder %s2663_s29, 1  ;;  %s2663_s29 = sphi %s2743_s29, %s24_s29  }
   0x2   : > { %p414_p1 = scmp.lt.s32.totalorder %s2663_s29, 3 }
   0x4   : > { %p415_p2 = pnand %p2259_p0, %p414_p1 }
   0x5   : > { %vm489_vm0 = vcmask (!%p415_p2), 1041408   ;;  %v2264_v0 = vld [vmem:[%s3045_s1 + $0x2] sm:$0x3] (!%p415_p2)  ;;  %s2260_s17 = sshll.u32 (!%p415_p2), %s2255_s30, 2  ;;  %v518_v2 = vld [vmem:[%s3045_s1] sm:$0x3] (!%p415_p2) }
   0x6   : > { %418 = sbr.rel (%p415_p2) target bundleno = 1334 (0x536), region = 76  ;;  %2627 = vmatprep.subr.msk.bf16.mxu0 (!%p415_p2), %vm489_vm0, %v2264_v0  ;;  %v564_v1 = vsel (!%p415_p2), %vm489_vm0, %v2264_v0, 0  ;;  %p461_p3 = scmp.lt.s32.totalorder (!%p415_p2), %s2260_s17, 7  ;;  %vm519_vm1 = vcmask (!%p415_p2), 1040384   ;;  %vm550_vm2 = vcmask (!%p415_p2), 31744   ;;  %v644_v12 = vsel (!%p415_p2), %vm489_vm0, %v518_v2, 0 }
   0x7   : > { %2418 = vmatpush3.bf16.msra.mxu0 (!%p415_p2), %v564_v1  ;;  %v2273_v29 = vld [vmem:[%s3045_s1 + $0x4] sm:$0x3] (!%p415_p2)  ;;  %vm908_vm3 = vcmask (!%p415_p2), 1043456   ;;  %v864_v60 = vld [vmem:[%s3047_s3] sm:$0xf] (!%p415_p2)  ;;  %vm895_vm4 = vcmask (!%p415_p2), 64512  }
   0x8   : > { %2628 = vmatprep.subr.msk.bf16.mxu0 (!%p415_p2), %vm489_vm0, %v518_v2  ;;  %v730_v50 = vsel (!%p415_p2), %vm489_vm0, %v2273_v29, 0  ;;  %v2279_v58 = vld [vmem:[%s3047_s3 + $0x4] sm:$0xf] (!%p415_p2)  ;;  %v1174_v61 = vld [vmem:[%s3049_s5] sm:$0x3] (!%p415_p2)  ;;  %vm1685_vm5 = vcmask (!%p415_p2), 130048  }
   0x9   : > { %2630 = vmatprep.subr.msk.bf16.mxu1 (!%p415_p2), %vm908_vm3, %v2279_v58  ;;  %v910_v59 = vsel (!%p415_p2), %vm908_vm3, %v2279_v58, 0  ;;  %v1183_v62 = vsel (!%p415_p2), %vm489_vm0, %v1174_v61, 0  ;;  %v2278_v63 = vld [vmem:[%s3046_s2] ss:$0 sm:$0xff] (!%p415_p2)  ;;  %vm2666_vm6 = vmmov (!%p415_p2), 0   ;;  %vm2109_vm7 = vcmask (!%p415_p2), 1041409  }
   0xa   : > { %2448 = vmatpush3.bf16.msra.mxu1 (!%p415_p2), %v910_v59  ;;  %vm2111_vm8 = vcmask (!%p415_p2), 1042434   ;;  %vm2113_vm9 = vcmask (!%p415_p2), 1043459   ;;  %vm2200_vm10 = vcmask (!%p415_p2), 0  }
   0xb   : > { %2631 = vmatprep.subr.msk.bf16.mxu1 (!%p415_p2), %vm908_vm3, %v864_v60 }
   0xd   : > { %s3060_s17 = smov (!%p461_p3, %s2260_s17), 7 }
   0xe   : > { %s2344_s20 = sshll.u32 %s3060_s17, 4  ;;  %s470_s22 = scalar_lea.vmem %s3058_s14, %s3060_s17 }
   0xf   : > { %s465_s23 = scalar_lea.vmem %s3044_s0, %s2344_s20 }
  0x10   : > { %v2766_v3 = vld [vmem:[%s465_s23] sm:$0xff]  ;;  %v474_v4 = vld [vmem:[%s465_s23 + $0x8] sm:$0xff]  ;;  %v2768_v5 = vld [vmem:[%s465_s23 + $0x10] sm:$0xff] }
  0x11   : > { %v520_v6 = vrot.slane %v2766_v3, 7  ;;  %v521_v7 = vrot.slane %v474_v4, 7  ;;  %v476_v8 = vld [vmem:[%s465_s23 + $0x18] sm:$0xff]  ;;  %v477_v9 = vld [vmem:[%s465_s23 + $0x20] sm:$0xff]  ;;  %v523_v10 = vrot.slane %v2768_v5, 7  ;;  %v478_v13 = vld [vmem:[%s465_s23 + $0x28] sm:$0xff]  ;;  %v711_v54 = vpack.c.bf16 %v474_v4, %v2766_v3 }
  0x12   : > { %v524_v11 = vrot.slane %v476_v8, 7  ;;  %v479_v14 = vld [vmem:[%s465_s23 + $0x30] sm:$0xff]  ;;  %v490_v15 = vrot.slane %v2766_v3, 6  ;;  %v526_v18 = vrot.slane %v477_v9, 7  ;;  %v480_v19 = vld [vmem:[%s465_s23 + $0x38] sm:$0xff]  ;;  %v491_v20 = vrot.slane %v474_v4, 6 }
  0x13   : > { %v522_v16 = vsel %vm519_vm1, %v520_v6, %v521_v7  ;;  %v540_v17 = vsel %vm519_vm1, 0.0, %v520_v6  ;;  %v541_v23 = vsel %vm519_vm1, 0.0, %v523_v10  ;;  %v527_v25 = vrot.slane %v478_v13, 7 }
  0x14   : > { %v544_v21 = vpack.c.bf16 %v522_v16, %v540_v17  ;;  %v525_v22 = vsel %vm519_vm1, %v523_v10, %v524_v11  ;;  %v542_v26 = vsel %vm519_vm1, 0.0, %v526_v18  ;;  %v529_v27 = vrot.slane %v479_v14, 7 }
  0x15   : > { %v545_v24 = vpack.c.bf16 %v525_v22, %v541_v23  ;;  %v530_v28 = vrot.slane %v480_v19, 7  ;;  %v528_v30 = vsel %vm519_vm1, %v526_v18, %v527_v25  ;;  %v492_v34 = vsel %vm489_vm0, %v490_v15, %v491_v20 }
  0x16   : > { %2419 = vmatprep.mubr.msk.bf16.mxu0 %vm550_vm2, %v544_v21  ;;  %v546_v31 = vpack.c.bf16 %v528_v30, %v542_v26  ;;  %v543_v33 = vsel %vm519_vm1, 0.0, %v529_v27  ;;  %v510_v35 = vsel %vm489_vm0, 0.0, %v490_v15  ;;  %v493_v37 = vrot.slane %v2768_v5, 6 }
  0x17   : > { %2420 = vmatmul.mubr.msk.bf16.vlgmr.msra.gmra.mrb[0].mxu0 %vm550_vm2, %v545_v24  ;;  %v531_v32 = vsel %vm519_vm1, %v529_v27, %v530_v28  ;;  %v494_v38 = vrot.slane %v476_v8, 6  ;;  %v514_v39 = vpack.c.bf16 %v492_v34, %v510_v35  ;;  %v496_v40 = vrot.slane %v477_v9, 6 }
  0x18   : > { %2428 = vmatpush3.bf16.msra.mxu0 %v644_v12  ;;  %2423 = vmatprep.mubr.msk.bf16.mxu0 %vm550_vm2, %v546_v31  ;;  %v547_v36 = vpack.c.bf16 %v531_v32, %v543_v33  ;;  %v497_v41 = vrot.slane %v478_v13, 6  ;;  %v511_v42 = vsel %vm489_vm0, 0.0, %v493_v37  ;;  %v499_v48 = vrot.slane %v479_v14, 6 }
  0x19   : > { %2629 = vmatprep.subr.msk.bf16.mxu0 %vm489_vm0, %v2273_v29  ;;  %v495_v43 = vsel %vm489_vm0, %v493_v37, %v494_v38  ;;  %v512_v45 = vsel %vm489_vm0, 0.0, %v496_v40  ;;  %v500_v49 = vrot.slane %v480_v19, 6  ;;  %v712_v55 = vpack.c.bf16 %v476_v8, %v2768_v5 }
  0x1a   : > { %v498_v44 = vsel %vm489_vm0, %v496_v40, %v497_v41  ;;  %v515_v46 = vpack.c.bf16 %v495_v43, %v511_v42  ;;  %v513_v52 = vsel %vm489_vm0, 0.0, %v499_v48  ;;  %v713_v56 = vpack.c.bf16 %v478_v13, %v477_v9 }
  0x1b   : > { %v516_v47 = vpack.c.bf16 %v498_v44, %v512_v45  ;;  %v501_v51 = vsel %vm489_vm0, %v499_v48, %v500_v49  ;;  %v714_v57 = vpack.c.bf16 %v480_v19, %v479_v14  ;;  %v990_v15 = vsel %vm908_vm3, %v864_v60, 0  ;;  %v2288_v48 = vld [vmem:[%s3047_s3 + $0x8] sm:$0xf] }
  0x1c   : > { %v517_v53 = vpack.c.bf16 %v501_v51, %v513_v52 }
  0x1f   : > { %2424 = vmatmul.mubr.msk.bf16.gmra.mrb[4].mxu0 %vm550_vm2, %v547_v36 }
  0x20   : > { %2429 = vmatprep.mubr.msk.bf16.mxu0 %vm550_vm2, %v514_v39 }
  0x27   : > { %2430 = vmatmul.mubr.msk.bf16.vlgmr.msra.gmra.mrb[0].mxu0 %vm550_vm2, %v515_v46 }
  0x28   : > { %2438 = vmatpush3.bf16.msra.mxu0 %v730_v50  ;;  %2433 = vmatprep.mubr.msk.bf16.mxu0 %vm550_vm2, %v516_v47 }
  0x29   : > { %2633 = vmatprep.subr.msk.bf16.mxu0 %vm489_vm0, %v1174_v61 }
  0x2f   : > { %2434 = vmatmul.mubr.msk.bf16.gmra.mrb[4].mxu0 %vm550_vm2, %v517_v53 }
  0x30   : > { %2439 = vmatprep.mubr.msk.bf16.mxu0 %vm550_vm2, %v711_v54 }
  0x37   : > { %2440 = vmatmul.mubr.msk.bf16.vlgmr.msra.gmra.mrb[0].mxu0 %vm550_vm2, %v712_v55 }
  0x38   : > { %2443 = vmatprep.mubr.msk.bf16.mxu0 %vm550_vm2, %v713_v56  ;;  %2478 = vmatpush3.bf16.msra.mxu0 %v1183_v62 }
  0x3f   : > { %2444 = vmatmul.mubr.msk.bf16.gmra.mrb[4].mxu0 %vm550_vm2, %v714_v57 }
  0x40   : > { %2479 = vmatprep.mubr.msk.bf16.mxu0 %vm550_vm2, %v711_v54 }
  0x47   : > { %2480 = vmatmul.mubr.msk.bf16.vlgmr.msra.gmra.mrb[8].mxu0 %vm550_vm2, %v712_v55 }
  0x48   : > { %2483 = vmatprep.mubr.msk.bf16.mxu0 %vm550_vm2, %v713_v56 }
  0x4f   : > { %2484 = vmatmul.mubr.msk.bf16.gmra.mrb[12].mxu0 %vm550_vm2, %v714_v57 }
 0x10a   : > { %v2441_v0 = vpop.f32.mrb[0].mxu0 }
 0x10b   : > { %v814_v1 = vadd.f32 %v2441_v0, %v2278_v63  ;;  %v766_v2 = vpop.f32.mrb[1].mxu0 }
 0x10c   : > { %v812_v3 = vadd.f32 %v2278_v63, %v766_v2  ;;  %v2442_v4 = vpop.f32.mrb[2].mxu0 }
 0x10d   : > { %v2831_v5 = vmax.f32 %v814_v1, 0.0  ;;  %v815_v6 = vadd.f32 %v2442_v4, %v2278_v63  ;;  %v769_v7 = vpop.f32.mrb[3].mxu0 }
 0x10e   : > { %v2833_v8 = vmax.f32 %v812_v3, 0.0  ;;  %v813_v9 = vadd.f32 %v2278_v63, %v769_v7 }
 0x10f   : > { %v839_v10 = vrot.slane %v2831_v5, 6  ;;  %v868_v11 = vrot.slane %v2831_v5, 7  ;;  %v2837_v12 = vmax.f32 %v815_v6, 0.0  ;;  %v1076_v6 = vsel %vm908_vm3, %v2288_v48, 0 }
 0x110   : > { %v2839_v13 = vmax.f32 %v813_v9, 0.0  ;;  %v865_v14 = vrot.slane %v2833_v8, 7  ;;  %v836_v17 = vrot.slane %v2833_v8, 6 }
 0x111   : > { %v2844_v16 = vsel %vm489_vm0, 0.0, %v839_v10  ;;  %v840_v18 = vrot.slane %v2837_v12, 6  ;;  %v869_v19 = vrot.slane %v2837_v12, 7  ;;  %v886_v20 = vsel %vm519_vm1, 0.0, %v868_v11 }
 0x112   : > { %v1058_v21 = vpack.c.bf16 %v2837_v12, %v2831_v5  ;;  %v837_v22 = vrot.slane %v2839_v13, 6  ;;  %v866_v23 = vrot.slane %v2839_v13, 7  ;;  %v2445_v24 = vpop.f32.mrb[4].mxu0  ;;  %v1057_v26 = vpack.c.bf16 %v2839_v13, %v2833_v8 }
 0x113   : > { %v841_v25 = vsel %vm489_vm0, %v839_v10, %v840_v18  ;;  %v818_v27 = vadd.f32 %v2445_v24, %v2278_v63  ;;  %v782_v28 = vpop.f32.mrb[5].mxu0  ;;  %v885_v29 = vsel %vm519_vm1, 0.0, %v865_v14  ;;  %v870_v34 = vsel %vm519_vm1, %v868_v11, %v869_v19  ;;  %v2649_v18 = vld [vmem:[%s3053_s9 + $0x8] sm:$0xff]   ;;  %v2294_v19 = vld [vmem:[%s3050_s6] ss:$0 sm:$0xff] }
 0x114   : > { %v861_v30 = vpack.c.bf16 %v841_v25, %v2844_v16  ;;  %v816_v31 = vadd.f32 %v2278_v63, %v782_v28  ;;  %v2446_v32 = vpop.f32.mrb[6].mxu0  ;;  %v867_v33 = vsel %vm519_vm1, %v865_v14, %v866_v23  ;;  %v890_v39 = vpack.c.bf16 %v870_v34, %v886_v20  ;;  %v2299_v14 = vld [vmem:[%s3051_s7 + $0x4] sm:$0xf]  ;;  %2517 = vmatprep.subr.bf16.mxu0 %v2649_v18  ;;  %v2293_v20 = vld [vmem:[%s3048_s4] ss:$0 sm:$0xff] }
 0x115   : > { %v826_v35 = vmax.f32 %v818_v27, 0.0  ;;  %v819_v36 = vadd.f32 %v2446_v32, %v2278_v63  ;;  %v785_v37 = vpop.f32.mrb[7].mxu0  ;;  %v889_v38 = vpack.c.bf16 %v867_v33, %v885_v29  ;;  %v856_v40 = vsel %vm489_vm0, 0.0, %v836_v17  ;;  %2518 = vmatpush3.bf16.msra.mxu0 %v2649_v18 }
 0x116   : > { %v824_v41 = vmax.f32 %v816_v31, 0.0  ;;  %v817_v42 = vadd.f32 %v2278_v63, %v785_v37  ;;  %v838_v43 = vsel %vm489_vm0, %v836_v17, %v837_v22  ;;  %v1346_v16 = vsel %vm908_vm3, %v2299_v14, 0  ;;  %v1302_v17 = vld [vmem:[%s3051_s7] sm:$0xf] }
 0x117   : > { %v845_v44 = vrot.slane %v826_v35, 6  ;;  %v874_v45 = vrot.slane %v826_v35, 7  ;;  %v827_v46 = vmax.f32 %v819_v36, 0.0  ;;  %2449 = vmatprep.mubr.msk.bf16.mxu1 %vm895_vm4, %v889_v38  ;;  %v860_v47 = vpack.c.bf16 %v838_v43, %v856_v40 }
 0x118   : > { %v842_v49 = vrot.slane %v824_v41, 6  ;;  %v825_v50 = vmax.f32 %v817_v42, 0.0  ;;  %2450 = vmatmul.mubr.msk.bf16.vlgmr.msra.gmra.mrb[0].mxu1 %vm895_vm4, %v890_v39  ;;  %v871_v51 = vrot.slane %v824_v41, 7 }
 0x119   : > { %v846_v52 = vrot.slane %v827_v46, 6  ;;  %v875_v53 = vrot.slane %v827_v46, 7  ;;  %2458 = vmatpush3.bf16.msra.mxu1 %v990_v15  ;;  %v859_v54 = vsel %vm489_vm0, 0.0, %v845_v44  ;;  %v888_v55 = vsel %vm519_vm1, 0.0, %v874_v45 }
 0x11a   : > { %v1060_v56 = vpack.c.bf16 %v827_v46, %v826_v35  ;;  %v843_v57 = vrot.slane %v825_v50, 6  ;;  %2632 = vmatprep.subr.msk.bf16.mxu1 %vm908_vm3, %v2288_v48  ;;  %v872_v58 = vrot.slane %v825_v50, 7  ;;  %v1059_v59 = vpack.c.bf16 %v825_v50, %v824_v41  ;;  %v2481_v7 = vpop.f32.mrb[8].mxu0 }
 0x11b   : > { %v876_v60 = vsel %vm519_vm1, %v874_v45, %v875_v53  ;;  %v847_v61 = vsel %vm489_vm0, %v845_v44, %v846_v52  ;;  %v858_v62 = vsel %vm489_vm0, 0.0, %v842_v49  ;;  %v887_v2 = vsel %vm519_vm1, 0.0, %v871_v51  ;;  %v1219_v8 = vpop.f32.mrb[9].mxu0 }
 0x11c   : > { %v892_v63 = vpack.c.bf16 %v876_v60, %v888_v55  ;;  %v844_v0 = vsel %vm489_vm0, %v842_v49, %v843_v57  ;;  %v863_v1 = vpack.c.bf16 %v847_v61, %v859_v54  ;;  %v873_v3 = vsel %vm519_vm1, %v871_v51, %v872_v58  ;;  %v2482_v9 = vpop.f32.mrb[10].mxu0 }
 0x11d   : > { %v862_v4 = vpack.c.bf16 %v844_v0, %v858_v62  ;;  %v891_v5 = vpack.c.bf16 %v873_v3, %v887_v2  ;;  %v1222_v10 = vpop.f32.mrb[11].mxu0  ;;  %v1228_v22 = vadd.f32 %v2481_v7, %v2294_v19  ;;  %v1220_v25 = vadd.f32 %v2294_v19, %v1219_v8 }
 0x11e   : > { %v1231_v34 = vadd.f32 %v2482_v9, %v2294_v19  ;;  %v1223_v37 = vadd.f32 %v2294_v19, %v1222_v10  ;;  %v1426_v48 = vsel %vm908_vm3, %v1302_v17, 0 }
 0x11f   : > { %2453 = vmatprep.mubr.msk.bf16.mxu1 %vm895_vm4, %v891_v5 }
 0x120   : > { %2454 = vmatmul.mubr.msk.bf16.gmra.mrb[4].mxu1 %vm895_vm4, %v892_v63 }
 0x121   : > { %2459 = vmatprep.mubr.msk.bf16.mxu1 %vm895_vm4, %v860_v47 }
 0x122   : > { %v2485_v11 = vpop.f32.mrb[12].mxu0 }
 0x123   : > { %v1235_v12 = vpop.f32.mrb[13].mxu0  ;;  %v1244_v39 = vadd.f32 %v2485_v11, %v2294_v19 }
 0x124   : > { %v2486_v13 = vpop.f32.mrb[14].mxu0  ;;  %v1236_v42 = vadd.f32 %v2294_v19, %v1235_v12 }
 0x125   : > { %v1238_v15 = vpop.f32.mrb[15].mxu0  ;;  %v1247_v43 = vadd.f32 %v2486_v13, %v2294_v19 }
 0x126   : > { %v1239_v47 = vadd.f32 %v2294_v19, %v1238_v15 }
 0x128   : > { %2460 = vmatmul.mubr.msk.bf16.vlgmr.msra.gmra.mrb[0].mxu1 %vm895_vm4, %v861_v30 }
 0x129   : > { %2468 = vmatpush3.bf16.msra.mxu1 %v1076_v6  ;;  %2463 = vmatprep.mubr.msk.bf16.mxu1 %vm895_vm4, %v862_v4 }
 0x12a   : > { %2634 = vmatprep.subr.msk.bf16.mxu1 %vm908_vm3, %v2299_v14 }
 0x130   : > { %2464 = vmatmul.mubr.msk.bf16.gmra.mrb[4].mxu1 %vm895_vm4, %v863_v1 }
 0x131   : > { %2469 = vmatprep.mubr.msk.bf16.mxu1 %vm895_vm4, %v1057_v26 }
 0x138   : > { %2470 = vmatmul.mubr.msk.bf16.vlgmr.msra.gmra.mrb[0].mxu1 %vm895_vm4, %v1058_v21 }
 0x139   : > { %2473 = vmatprep.mubr.msk.bf16.mxu1 %vm895_vm4, %v1059_v59  ;;  %2488 = vmatpush3.bf16.msra.mxu1 %v1346_v16 }
 0x13a   : > { %2635 = vmatprep.subr.msk.bf16.mxu1 %vm908_vm3, %v1302_v17 }
 0x140   : > { %2474 = vmatmul.mubr.msk.bf16.gmra.mrb[4].mxu1 %vm895_vm4, %v1060_v56 }
 0x20b   : > { %v2471_v21 = vpop.f32.mrb[0].mxu1 }
 0x20c   : > { %v1160_v23 = vadd.f32 %v2471_v21, %v2293_v20  ;;  %v1112_v24 = vpop.f32.mrb[1].mxu1 }
 0x20d   : > { %v1158_v26 = vadd.f32 %v2293_v20, %v1112_v24  ;;  %v2472_v27 = vpop.f32.mrb[2].mxu1 }
 0x20e   : > { %v1168_v28 = vmax.f32 %v1160_v23, 0.0  ;;  %v1161_v29 = vadd.f32 %v2472_v27, %v2293_v20  ;;  %v1115_v30 = vpop.f32.mrb[3].mxu1 }
 0x20f   : > { %v1166_v31 = vmax.f32 %v1158_v26, 0.0  ;;  %v1159_v32 = vadd.f32 %v2293_v20, %v1115_v30 }
 0x210   : > { %v1252_v33 = vadd.f32 %v1228_v22, %v1168_v28  ;;  %v1169_v35 = vmax.f32 %v1161_v29, 0.0  ;;  %v2308_v28 = vld [vmem:[%s3051_s7 + $0x8] sm:$0xf] }
 0x211   : > { %v1250_v36 = vadd.f32 %v1220_v25, %v1166_v31  ;;  %v1167_v38 = vmax.f32 %v1159_v32, 0.0 }
 0x212   : > { %v1260_v40 = vmax.f32 %v1252_v33, 0.0  ;;  %v1253_v41 = vadd.f32 %v1231_v34, %v1169_v35 }
 0x213   : > { %v1258_v44 = vmax.f32 %v1250_v36, 0.0  ;;  %v1251_v45 = vadd.f32 %v1223_v37, %v1167_v38  ;;  %v2475_v46 = vpop.f32.mrb[4].mxu1 }
 0x214   : > { %v1277_v49 = vrot.slane %v1260_v40, 4  ;;  %v1306_v50 = vrot.slane %v1260_v40, 6  ;;  %v1261_v51 = vmax.f32 %v1253_v41, 0.0  ;;  %v1164_v52 = vadd.f32 %v2475_v46, %v2293_v20  ;;  %v1128_v53 = vpop.f32.mrb[5].mxu1 }
 0x215   : > { %v1274_v54 = vrot.slane %v1258_v44, 4  ;;  %v1303_v55 = vrot.slane %v1258_v44, 6  ;;  %v1259_v56 = vmax.f32 %v1251_v45, 0.0  ;;  %v1162_v57 = vadd.f32 %v2293_v20, %v1128_v53  ;;  %v2476_v58 = vpop.f32.mrb[6].mxu1 }
 0x216   : > { %v2908_v59 = vsel %vm908_vm3, 0.0, %v1277_v49  ;;  %v1324_v60 = vsel %vm489_vm0, 0.0, %v1306_v50  ;;  %v1278_v61 = vrot.slane %v1261_v51, 4  ;;  %v1307_v62 = vrot.slane %v1261_v51, 6  ;;  %v1131_v63 = vpop.f32.mrb[7].mxu1 }
 0x217   : > { %v2911_v0 = vpack.c.bf16 %v1261_v51, %v1260_v40  ;;  %v1275_v1 = vrot.slane %v1259_v56, 4  ;;  %v1304_v2 = vrot.slane %v1259_v56, 6  ;;  %v1172_v3 = vmax.f32 %v1164_v52, 0.0  ;;  %v1967_v52 = vld [vmem:[%s3055_s11] sm:$0xf] }
 0x218   : > { %v1279_v4 = vsel %vm908_vm3, %v1277_v49, %v1278_v61  ;;  %v1308_v5 = vsel %vm489_vm0, %v1306_v50, %v1307_v62  ;;  %v1170_v6 = vmax.f32 %v1162_v57, 0.0  ;;  %v1165_v7 = vadd.f32 %v2476_v58, %v2293_v20 }
 0x219   : > { %v1299_v8 = vpack.c.bf16 %v1279_v4, %v2908_v59  ;;  %v1328_v9 = vpack.c.bf16 %v1308_v5, %v1324_v60  ;;  %v1256_v10 = vadd.f32 %v1244_v39, %v1172_v3  ;;  %v1163_v11 = vadd.f32 %v2293_v20, %v1131_v63 }
 0x21a   : > { %v1254_v12 = vadd.f32 %v1236_v42, %v1170_v6  ;;  %v1173_v13 = vmax.f32 %v1165_v7, 0.0  ;;  %v1305_v14 = vsel %vm489_vm0, %v1303_v55, %v1304_v2  ;;  %v1323_v15 = vsel %vm489_vm0, 0.0, %v1303_v55  ;;  %v2313_v55 = vld [vmem:[%s3052_s8] ss:$0 sm:$0xff] }
 0x21b   : > { %v1264_v16 = vmax.f32 %v1256_v10, 0.0  ;;  %v1171_v17 = vmax.f32 %v1163_v11, 0.0  ;;  %v1327_v18 = vpack.c.bf16 %v1305_v14, %v1323_v15  ;;  %v1276_v19 = vsel %vm908_vm3, %v1274_v54, %v1275_v1 }
 0x21c   : > { %v1262_v21 = vmax.f32 %v1254_v12, 0.0  ;;  %v1257_v22 = vadd.f32 %v1247_v43, %v1173_v13  ;;  %v1294_v23 = vsel %vm908_vm3, 0.0, %v1274_v54  ;;  %v1493_v24 = vpack.c.bf16 %v1259_v56, %v1258_v44  ;;  %v2650_v54 = vld [vmem:[%s3053_s9] sm:$0xff]  }
 0x21d   : > { %v1283_v25 = vrot.slane %v1264_v16, 4  ;;  %v1312_v26 = vrot.slane %v1264_v16, 6  ;;  %v1255_v27 = vadd.f32 %v1239_v47, %v1171_v17  ;;  %2489 = vmatprep.mubr.msk.bf16.mxu1 %vm895_vm4, %v1327_v18  ;;  %v1298_v20 = vpack.c.bf16 %v1276_v19, %v1294_v23  ;;  %2527 = vmatprep.subr.bf16.mxu0 %v2650_v54 }
 0x21e   : > { %v1280_v29 = vrot.slane %v1262_v21, 4  ;;  %v1309_v30 = vrot.slane %v1262_v21, 6  ;;  %v1265_v31 = vmax.f32 %v1257_v22, 0.0  ;;  %2490 = vmatmul.mubr.msk.bf16.vlgmr.msra.gmra.mrb[8].mxu1 %vm895_vm4, %v1328_v9  ;;  %v1512_v51 = vsel %vm908_vm3, %v2308_v28, 0 }
 0x21f   : > { %v1263_v32 = vmax.f32 %v1255_v27, 0.0  ;;  %2498 = vmatpush3.bf16.msra.mxu1 %v1426_v48  ;;  %v1326_v35 = vsel %vm489_vm0, 0.0, %v1312_v26  ;;  %v1297_v36 = vsel %vm908_vm3, 0.0, %v1283_v25  ;;  %v1976_v53 = vsel %vm908_vm3, %v1967_v52, 0 }
 0x220   : > { %v1284_v33 = vrot.slane %v1265_v31, 4  ;;  %v1313_v34 = vrot.slane %v1265_v31, 6  ;;  %2636 = vmatprep.subr.msk.bf16.mxu1 %vm908_vm3, %v2308_v28  ;;  %v1496_v40 = vpack.c.bf16 %v1265_v31, %v1264_v16  ;;  %v1325_v41 = vsel %vm489_vm0, 0.0, %v1309_v30 }
 0x221   : > { %v1281_v37 = vrot.slane %v1263_v32, 4  ;;  %v1310_v38 = vrot.slane %v1263_v32, 6  ;;  %v1495_v39 = vpack.c.bf16 %v1263_v32, %v1262_v21  ;;  %v1296_v43 = vsel %vm908_vm3, 0.0, %v1280_v29 }
 0x222   : > { %v1314_v42 = vsel %vm489_vm0, %v1312_v26, %v1313_v34  ;;  %v1285_v44 = vsel %vm908_vm3, %v1283_v25, %v1284_v33 }
 0x223   : > { %v1311_v45 = vsel %vm489_vm0, %v1309_v30, %v1310_v38  ;;  %v1330_v46 = vpack.c.bf16 %v1314_v42, %v1326_v35  ;;  %v1282_v47 = vsel %vm908_vm3, %v1280_v29, %v1281_v37  ;;  %v1301_v48 = vpack.c.bf16 %v1285_v44, %v1297_v36  ;;  %v2651_v37 = vld [vmem:[%s3053_s9 + $0x10] sm:$0xff]  }
 0x224   : > { %v1329_v49 = vpack.c.bf16 %v1311_v45, %v1325_v41  ;;  %v1300_v50 = vpack.c.bf16 %v1282_v47, %v1296_v43 }
 0x226   : > { %2493 = vmatprep.mubr.msk.bf16.mxu1 %vm895_vm4, %v1329_v49 }
 0x227   : > { %2494 = vmatmul.mubr.msk.bf16.gmra.mrb[12].mxu1 %vm895_vm4, %v1330_v46 }
 0x228   : > { %2499 = vmatprep.mubr.msk.bf16.mxu1 %vm895_vm4, %v1298_v20 }
 0x22f   : > { %2500 = vmatmul.mubr.msk.bf16.vlgmr.msra.gmra.mrb[8].mxu1 %vm895_vm4, %v1299_v8 }
 0x230   : > { %2508 = vmatpush3.bf16.msra.mxu1 %v1512_v51  ;;  %2503 = vmatprep.mubr.msk.bf16.mxu1 %vm895_vm4, %v1300_v50 }
 0x231   : > { %2637 = vmatprep.subr.msk.bf16.mxu1 %vm908_vm3, %v1967_v52 }
 0x237   : > { %2504 = vmatmul.mubr.msk.bf16.gmra.mrb[12].mxu1 %vm895_vm4, %v1301_v48 }
 0x238   : > { %2509 = vmatprep.mubr.msk.bf16.mxu1 %vm895_vm4, %v1493_v24 }
 0x23f   : > { %2510 = vmatmul.mubr.msk.bf16.vlgmr.msra.gmra.mrb[8].mxu1 %vm895_vm4, %v2911_v0 }
 0x240   : > { %2513 = vmatprep.mubr.msk.bf16.mxu1 %vm895_vm4, %v1495_v39  ;;  %2548 = vmatpush3.bf16.msra.mxu1 %v1976_v53 }
 0x247   : > { %2514 = vmatmul.mubr.msk.bf16.gmra.mrb[12].mxu1 %vm895_vm4, %v1496_v40 }
 0x248   : > { %2549 = vmatprep.mubr.msk.bf16.mxu1 %vm895_vm4, %v1493_v24 }
 0x24f   : > { %2550 = vmatmul.mubr.msk.bf16.vlgmr.msra.gmra.mrb[16].mxu1 %vm895_vm4, %v2911_v0 }
 0x250   : > { %2553 = vmatprep.mubr.msk.bf16.mxu1 %vm895_vm4, %v1495_v39 }
 0x257   : > { %2554 = vmatmul.mubr.msk.bf16.gmra.mrb[20].mxu1 %vm895_vm4, %v1496_v40 }
 0x312   : > { %v2511_v56 = vpop.f32.mrb[8].mxu1 }
 0x313   : > { %v1596_v57 = vadd.f32 %v2511_v56, %v2313_v55  ;;  %v1548_v58 = vpop.f32.mrb[9].mxu1 }
 0x314   : > { %v1594_v59 = vadd.f32 %v2313_v55, %v1548_v58  ;;  %v2512_v60 = vpop.f32.mrb[10].mxu1 }
 0x315   : > { %v2962_v61 = vmax.f32 %v1596_v57, 0.0  ;;  %v1597_v62 = vadd.f32 %v2512_v60, %v2313_v55  ;;  %v1551_v63 = vpop.f32.mrb[11].mxu1 }
 0x316   : > { %v2964_v0 = vmax.f32 %v1594_v59, 0.0  ;;  %v1595_v1 = vadd.f32 %v2313_v55, %v1551_v63 }
 0x317   : > { %v1621_v2 = vrot.slane %v2962_v61, 4  ;;  %v1651_v3 = vrot.slane %v2962_v61, 6  ;;  %v2968_v4 = vmax.f32 %v1597_v62, 0.0 }
 0x318   : > { %v1618_v5 = vrot.slane %v2964_v0, 4  ;;  %v2971_v6 = vmax.f32 %v1595_v1, 0.0  ;;  %v1648_v8 = vrot.slane %v2964_v0, 6 }
 0x319   : > { %v2974_v7 = vsel %vm908_vm3, 0.0, %v1621_v2  ;;  %v1622_v9 = vrot.slane %v2968_v4, 4  ;;  %v1652_v10 = vrot.slane %v2968_v4, 6  ;;  %v1669_v11 = vsel %vm489_vm0, 0.0, %v1651_v3 }
 0x31a   : > { %v1638_v12 = vsel %vm908_vm3, 0.0, %v1618_v5  ;;  %v1847_v13 = vpack.c.bf16 %v2968_v4, %v2962_v61  ;;  %v1619_v14 = vrot.slane %v2971_v6, 4  ;;  %v2515_v15 = vpop.f32.mrb[12].mxu1  ;;  %v1649_v18 = vrot.slane %v2971_v6, 6  ;;  %v2334_v61 = vld [vmem:[%s3056_s12] ss:$0 sm:$0xff] }
 0x31b   : > { %v1623_v16 = vsel %vm908_vm3, %v1621_v2, %v1622_v9  ;;  %v1653_v17 = vsel %vm489_vm0, %v1651_v3, %v1652_v10  ;;  %v1846_v19 = vpack.c.bf16 %v2971_v6, %v2964_v0  ;;  %v1564_v21 = vpop.f32.mrb[13].mxu1  ;;  %v1600_v24 = vadd.f32 %v2515_v15, %v2313_v55  ;;  %v2333_v9 = vld [vmem:[%s3054_s10] ss:$0 sm:$0xff] }
 0x31c   : > { %v1643_v22 = vpack.c.bf16 %v1623_v16, %v2974_v7  ;;  %v1673_v23 = vpack.c.bf16 %v1653_v17, %v1669_v11  ;;  %v1598_v25 = vadd.f32 %v2313_v55, %v1564_v21  ;;  %v2516_v26 = vpop.f32.mrb[14].mxu1  ;;  %v1668_v27 = vsel %vm489_vm0, 0.0, %v1648_v8  ;;  %v2652_v7 = vld [vmem:[%s3057_s13] sm:$0xff]  }
 0x31d   : > { %v1601_v20 = vadd.f32 %v2516_v26, %v2313_v55  ;;  %v1567_v28 = vpop.f32.mrb[15].mxu1  ;;  %v1650_v29 = vsel %vm489_vm0, %v1648_v8, %v1649_v18  ;;  %v1620_v30 = vsel %vm908_vm3, %v1618_v5, %v1619_v14  ;;  %v1608_v31 = vmax.f32 %v1600_v24, 0.0 }
 0x31e   : > { %v1606_v32 = vmax.f32 %v1598_v25, 0.0  ;;  %v1599_v33 = vadd.f32 %v2313_v55, %v1567_v28  ;;  %v1672_v34 = vpack.c.bf16 %v1650_v29, %v1668_v27  ;;  %v1642_v36 = vpack.c.bf16 %v1620_v30, %v1638_v12 }
 0x31f   : > { %v1609_v35 = vmax.f32 %v1601_v20, 0.0  ;;  %v1627_v38 = vrot.slane %v1608_v31, 4  ;;  %v1657_v39 = vrot.slane %v1608_v31, 6  ;;  %v2665_v8 = vmov 0.0  }
 0x320   : > { %v1624_v40 = vrot.slane %v1606_v32, 4  ;;  %v1654_v41 = vrot.slane %v1606_v32, 6  ;;  %2519 = vmatprep.mubr.msk.bf16.mxu0 %vm1685_vm5, %v1672_v34  ;;  %v1607_v45 = vmax.f32 %v1599_v33, 0.0 }
 0x321   : > { %v1628_v42 = vrot.slane %v1609_v35, 4  ;;  %v1658_v43 = vrot.slane %v1609_v35, 6  ;;  %v1849_v44 = vpack.c.bf16 %v1609_v35, %v1608_v31  ;;  %2520 = vmatmul.mubr.msk.bf16.vlgmr.msra.gmra.mrb[16].mxu0 %vm1685_vm5, %v1673_v23  ;;  %v1641_v47 = vsel %vm908_vm3, 0.0, %v1627_v38 }
 0x322   : > { %2528 = vmatpush3.bf16.msra.mxu0 %v2650_v54  ;;  %v2551_v46 = vpop.f32.mrb[16].mxu1  ;;  %v1625_v48 = vrot.slane %v1607_v45, 4  ;;  %v1655_v49 = vrot.slane %v1607_v45, 6  ;;  %v1848_v50 = vpack.c.bf16 %v1607_v45, %v1606_v32  ;;  %v1671_v52 = vsel %vm489_vm0, 0.0, %v1657_v39 }
 0x323   : > { %v2012_v51 = vpop.f32.mrb[17].mxu1  ;;  %2537 = vmatprep.subr.bf16.mxu0 %v2651_v37  ;;  %v1640_v53 = vsel %vm908_vm3, 0.0, %v1624_v40  ;;  %v1659_v56 = vsel %vm489_vm0, %v1657_v39, %v1658_v43  ;;  %v1629_v57 = vsel %vm908_vm3, %v1627_v38, %v1628_v42  ;;  %v1670_v58 = vsel %vm489_vm0, 0.0, %v1654_v41 }
 0x324   : > { %v2552_v55 = vpop.f32.mrb[18].mxu1  ;;  %v1656_v59 = vsel %vm489_vm0, %v1654_v41, %v1655_v49  ;;  %v1675_v60 = vpack.c.bf16 %v1659_v56, %v1671_v52  ;;  %v1626_v62 = vsel %vm908_vm3, %v1624_v40, %v1625_v48  ;;  %v1645_v1 = vpack.c.bf16 %v1629_v57, %v1641_v47 }
 0x325   : > { %v2015_v54 = vpop.f32.mrb[19].mxu1  ;;  %v1674_v63 = vpack.c.bf16 %v1656_v59, %v1670_v58  ;;  %v1644_v0 = vpack.c.bf16 %v1626_v62, %v1640_v53  ;;  %v2021_v14 = vadd.f32 %v2551_v46, %v2334_v61  ;;  %v2013_v18 = vadd.f32 %v2334_v61, %v2012_v51 }
 0x326   : > { %v2016_v25 = vadd.f32 %v2334_v61, %v2015_v54 }
 0x327   : > { %2523 = vmatprep.mubr.msk.bf16.mxu0 %vm1685_vm5, %v1674_v63 }
 0x329   : > { %2524 = vmatmul.mubr.msk.bf16.gmra.mrb[20].mxu0 %vm1685_vm5, %v1675_v60 }
 0x32a   : > { %2529 = vmatprep.mubr.msk.bf16.mxu0 %vm1685_vm5, %v1642_v36  ;;  %v2555_v2 = vpop.f32.mrb[20].mxu1 }
 0x32b   : > { %v2028_v3 = vpop.f32.mrb[21].mxu1  ;;  %v2037_v32 = vadd.f32 %v2555_v2, %v2334_v61 }
 0x32c   : > { %v2556_v5 = vpop.f32.mrb[22].mxu1  ;;  %v2029_v36 = vadd.f32 %v2334_v61, %v2028_v3 }
 0x32d   : > { %v2031_v6 = vpop.f32.mrb[23].mxu1 }
 0x331   : > { %2530 = vmatmul.mubr.msk.bf16.vlgmr.msra.gmra.mrb[16].mxu0 %vm1685_vm5, %v1643_v22  ;;  %v2024_v22 = vadd.f32 %v2552_v55, %v2334_v61  ;;  %v2032_v55 = vadd.f32 %v2334_v61, %v2031_v6 }
 0x332   : > { %2538 = vmatpush3.bf16.msra.mxu0 %v2651_v37  ;;  %2533 = vmatprep.mubr.msk.bf16.mxu0 %vm1685_vm5, %v1644_v0 }
 0x333   : > { %2557 = vmatprep.subr.bf16.mxu0 %v2665_v8 }
 0x339   : > { %2534 = vmatmul.mubr.msk.bf16.gmra.mrb[20].mxu0 %vm1685_vm5, %v1645_v1 }
 0x33a   : > { %2539 = vmatprep.mubr.msk.bf16.mxu0 %vm1685_vm5, %v1846_v19 }
 0x341   : > { %2540 = vmatmul.mubr.msk.bf16.vlgmr.msra.gmra.mrb[16].mxu0 %vm1685_vm5, %v1847_v13 }
 0x342   : > { %2543 = vmatprep.mubr.msk.bf16.mxu0 %vm1685_vm5, %v1848_v50  ;;  %2558 = vmatpush3.bf16.msra.mxu0 %v2652_v7  ;;  %v2040_v50 = vadd.f32 %v2556_v5, %v2334_v61 }
 0x349   : > { %2544 = vmatmul.mubr.msk.bf16.gmra.mrb[20].mxu0 %vm1685_vm5, %v1849_v44 }
 0x34a   : > { %2559 = vmatprep.mubr.msk.bf16.mxu0 %vm2666_vm6, %v2665_v8 }
 0x414   : > { %v2541_v4 = vpop.f32.mrb[16].mxu0 }
 0x415   : > { %v1953_v10 = vadd.f32 %v2541_v4, %v2333_v9  ;;  %v1905_v11 = vpop.f32.mrb[17].mxu0 }
 0x416   : > { %v1951_v12 = vadd.f32 %v2333_v9, %v1905_v11  ;;  %v2542_v13 = vpop.f32.mrb[18].mxu0 }
 0x417   : > { %v1961_v15 = vmax.f32 %v1953_v10, 0.0  ;;  %v1954_v16 = vadd.f32 %v2542_v13, %v2333_v9  ;;  %v1908_v17 = vpop.f32.mrb[19].mxu0 }
 0x418   : > { %v1959_v19 = vmax.f32 %v1951_v12, 0.0  ;;  %v1952_v21 = vadd.f32 %v2333_v9, %v1908_v17 }
 0x419   : > { %v2045_v23 = vadd.f32 %v2021_v14, %v1961_v15  ;;  %v1962_v24 = vmax.f32 %v1954_v16, 0.0 }
 0x41a   : > { %v2043_v26 = vadd.f32 %v2013_v18, %v1959_v19  ;;  %v1960_v27 = vmax.f32 %v1952_v21, 0.0 }
 0x41b   : > { %v2053_v20 = vmax.f32 %v2045_v23, 0.0  ;;  %v2046_v28 = vadd.f32 %v2024_v22, %v1962_v24 }
 0x41c   : > { %v2051_v29 = vmax.f32 %v2043_v26, 0.0  ;;  %v2044_v30 = vadd.f32 %v2016_v25, %v1960_v27  ;;  %v2545_v31 = vpop.f32.mrb[20].mxu0 }
 0x41d   : > { %v2054_v33 = vmax.f32 %v2046_v28, 0.0  ;;  %v1957_v34 = vadd.f32 %v2545_v31, %v2333_v9  ;;  %v1921_v35 = vpop.f32.mrb[21].mxu0  ;;  %v2068_v37 = vsel %vm1685_vm5, %v2053_v20, -inf }
 0x41e   : > { %v2052_v38 = vmax.f32 %v2044_v30, 0.0  ;;  %v1955_v39 = vadd.f32 %v2333_v9, %v1921_v35  ;;  %v2546_v40 = vpop.f32.mrb[22].mxu0  ;;  %v2059_v41 = vsel %vm1685_vm5, %v2051_v29, -inf }
 0x41f   : > { %v2069_v42 = vsel %vm1685_vm5, %v2054_v33, -inf  ;;  %v1965_v43 = vmax.f32 %v1957_v34, 0.0  ;;  %v1958_v44 = vadd.f32 %v2546_v40, %v2333_v9  ;;  %v1924_v45 = vpop.f32.mrb[23].mxu0 }
 0x420   : > { %v2070_v46 = vmax.f32 %v2068_v37, %v2069_v42  ;;  %v2060_v47 = vsel %vm1685_vm5, %v2052_v38, -inf  ;;  %v1963_v48 = vmax.f32 %v1955_v39, 0.0  ;;  %v1956_v49 = vadd.f32 %v2333_v9, %v1924_v45 }
 0x421   : > { %v2061_v51 = vmax.f32 %v2059_v41, %v2060_v47  ;;  %v2049_v52 = vadd.f32 %v2037_v32, %v1965_v43  ;;  %v1966_v53 = vmax.f32 %v1958_v44, 0.0 }
 0x422   : > { %v2071_v56 = vrot.slane %v2070_v46, 4  ;;  %v2047_v57 = vadd.f32 %v2029_v36, %v1963_v48  ;;  %v1964_v58 = vmax.f32 %v1956_v49, 0.0  ;;  %v2667_v48 = vmov 1966171168  }
 0x423   : > { %v2062_v54 = vrot.slane %v2061_v51, 4  ;;  %v2057_v59 = vmax.f32 %v2049_v52, 0.0  ;;  %v2050_v60 = vadd.f32 %v2040_v50, %v1966_v53  ;;  %v2173_v49 = vunpack.c.l.s4 %v2667_v48 }
 0x424   : > { %v2072_v62 = vmax.f32 %v2070_v46, %v2071_v56  ;;  %v2055_v63 = vmax.f32 %v2047_v57, 0.0  ;;  %v2048_v0 = vadd.f32 %v2032_v55, %v1964_v58  ;;  %v2175_v50 = vlaneseq }
 0x425   : > { %v2063_v1 = vmax.f32 %v2061_v51, %v2062_v54  ;;  %v2058_v2 = vmax.f32 %v2050_v60, 0.0  ;;  %v2086_v5 = vsel %vm1685_vm5, %v2057_v59, -inf  ;;  %v2174_v51 = vunpack.c.0.s8 %v2173_v49 }
 0x426   : > { %v2073_v3 = vrot.slane %v2072_v62, 2  ;;  %v2056_v7 = vmax.f32 %v2048_v0, 0.0  ;;  %v2077_v6 = vsel %vm1685_vm5, %v2055_v63, -inf  ;;  %v2176_v52 = vshrl.u32 %v2175_v50, 7 }
 0x427   : > { %v2064_v8 = vrot.slane %v2063_v1, 2  ;;  %v2087_v9 = vsel %vm1685_vm5, %v2058_v2, -inf }
 0x428   : > { %v2074_v4 = vmax.f32 %v2072_v62, %v2073_v3  ;;  %v2088_v61 = vmax.f32 %v2086_v5, %v2087_v9  ;;  %v2078_v10 = vsel %vm1685_vm5, %v2056_v7, -inf  ;;  %v2177_v53 = vsub.s32 %v2174_v51, %v2176_v52 }
 0x429   : > { %v2065_v11 = vmax.f32 %v2063_v1, %v2064_v8  ;;  %v2079_v12 = vmax.f32 %v2077_v6, %v2078_v10 }
 0x42a   : > { %v2075_v13 = vrot.slane %v2074_v4, 1  ;;  %v2089_v14 = vrot.slane %v2088_v61, 4 }
 0x42b   : > { %v2066_v15 = vrot.slane %v2065_v11, 1  ;;  %v2080_v16 = vrot.slane %v2079_v12, 4 }
 0x42c   : > { %v2076_v17 = vmax.f32 %v2074_v4, %v2075_v13  ;;  %v2090_v18 = vmax.f32 %v2088_v61, %v2089_v14 }
 0x42d   : > { %v2067_v19 = vmax.f32 %v2065_v11, %v2066_v15  ;;  %v2081_v21 = vmax.f32 %v2079_v12, %v2080_v16 }
 0x42e   : > { %v2096_v22 = vpack.c.bf16 %v2076_v17, %v2076_v17  ;;  %v2091_v23 = vrot.slane %v2090_v18, 2 }
 0x42f   : > { %v2095_v24 = vpack.c.bf16 %v2067_v19, %v2067_v19  ;;  %v2082_v25 = vrot.slane %v2081_v21, 2 }
 0x430   : > { %v2106_v26 = vunpack.c.l.b16 %v2096_v22  ;;  %v2092_v27 = vmax.f32 %v2090_v18, %v2091_v23 }
 0x431   : > { %v2105_v20 = vunpack.c.l.b16 %v2095_v24  ;;  %v2083_v28 = vmax.f32 %v2081_v21, %v2082_v25 }
 0x432   : > { %v2093_v29 = vrot.slane %v2092_v27, 1 }
 0x433   : > { %v2110_v30 = vsel %vm2109_vm7, %v2106_v26, %v2105_v20  ;;  %v2084_v31 = vrot.slane %v2083_v28, 1 }
 0x434   : > { %v2094_v32 = vmax.f32 %v2092_v27, %v2093_v29 }
 0x435   : > { %v2085_v33 = vmax.f32 %v2083_v28, %v2084_v31 }
 0x436   : > { %v2098_v34 = vpack.c.bf16 %v2094_v32, %v2094_v32 }
 0x437   : > { %v2097_v35 = vpack.c.bf16 %v2085_v33, %v2085_v33 }
 0x438   : > { %v2108_v37 = vunpack.c.l.b16 %v2098_v34 }
 0x439   : > { %v2107_v36 = vunpack.c.l.b16 %v2097_v35 }
 0x43b   : > { %v2112_v38 = vsel %vm2111_vm8, %v2107_v36, %v2110_v30 }
 0x43c   : > { %v2114_v39 = vsel %vm2113_vm9, %v2108_v37, %v2112_v38 }
 0x43d   : > { %v2115_v40 = vpack.c.b16 %v2114_v39, %v2114_v39 }
 0x43f   : > { %2560 = vmatmul.mubr.msk.bf16.vlgmr.msra.gmra.mrb[24].mxu0 %vm1685_vm5, %v2115_v40 }
 0x512   : > { %v2159_v41 = vpop.f32.mrb[24].mxu0 }
 0x513   : > { %v2341_v42 = vmul.f32 -1.442695, %v2159_v41  ;;  %v2561_v43 = vpop.f32.mrb[25].mxu0 }
 0x514   : > { %v2162_v44 = vpop.f32.mrb[26].mxu0 }
 0x515   : > { %2653 = vpow2.f32 %v2341_v42  ;;  %v2562_v45 = vpop.f32.mrb[27].mxu0 }
 0x51f   : > { %v2654_v46 = vpop.eup %2653 }
 0x520   : > { %v2168_v47 = vadd.f32 1.0, %v2654_v46 }
 0x522   : > { %2655 = vrcp.f32 %v2168_v47 }
 0x52c   : > { %v2656_v55 = vpop.eup %2655 }
 0x52d   : > { %v2178_v56 = vrot.slane %v2656_v55, %v2177_v53 }
 0x52f   : > { %v2179_v57 = vcombine.high %v2178_v56, %v2178_v56  ;;  %v2186_v58 = vrot.slane %v2178_v56, %v2177_v53 }
 0x531   : > { %v2193_v54 = vrot.slane %v2179_v57, %v2177_v53  ;;  %v2194_v59 = vcombine.high %v2186_v58, %v2186_v58  ;;  %2201 = vst.msk [vmem:[%s470_s22] sm:$0x1] %vm2200_vm10, %v2186_v58 }
 0x533   : > { %v2195_v60 = vcombine.high %v2193_v54, %v2193_v54  ;;  %2202 = vst.msk [vmem:[%s470_s22 + $0x1] sm:$0x1] %vm2200_vm10, %v2193_v54  ;;  %2203 = vst.msk [vmem:[%s470_s22 + $0x2] sm:$0x1] %vm2200_vm10, %v2194_v59 }
 0x535   : > { %2204 = vst.msk [vmem:[%s470_s22 + $0x3] sm:$0x1] %vm2200_vm10, %v2195_v60 }
 0x536 PF: > { %s24_s29 = sadd.s32 1, %s2663_s29  }
 0x537   : > { %p21_p4 = scmp.ge.s32.totalorder %s24_s29, 4  }
 0x539   :  { %23 = sbr.rel (!%p21_p4) target bundleno = 1 (0x1), region = 114 }

</bundles_post_ra>
